<compile_context>
chip_gen: v7x
topology: tpu7x:2x2x1
jax: 0.10.0
libtpu: 0.0.40
codegen_flags: <defaults>
</compile_context>

<pallas_src>
import jax
import jax.numpy as jnp
from jax.experimental import pallas as pl
from jax.experimental.pallas import tpu as pltpu

# Logical (PyTorch) sizes.
N_INPUT = 784
N_HIDDEN = 392
N_BOTTLENECK = 8
N_OUTPUT = 784

# Lane-padded internal sizes (multiples of 128) for the hidden activations.
P_HID = 512
P_BOT = 128

_BF16_SUBLANE = 16  # bf16 packs 16 rows per vreg


def _round_up(n, m):
    return (n + m - 1) // m * m


def _mlp4_kernel(x_ref,
                 w1_ref, b1_ref,
                 w2_ref, b2_ref,
                 w3_ref, b3_ref,
                 w4_ref, b4_ref,
                 o_ref):
    # x arrives f32 straight from HBM; cast to bf16 right before the MXU.
    # f32 accumulation on every dot; bias-add + ReLU + bf16 cast fused per
    # layer so only the bf16 activation feeds the next dot.
    x = x_ref[...].astype(jnp.bfloat16)                              # [tb, 784]

    h = jnp.dot(x, w1_ref[...], preferred_element_type=jnp.float32)
    h = jnp.maximum(h + b1_ref[...], 0.0).astype(jnp.bfloat16)       # [tb, 512]

    z = jnp.dot(h, w2_ref[...], preferred_element_type=jnp.float32)
    z = jnp.maximum(z + b2_ref[...], 0.0).astype(jnp.bfloat16)       # [tb, 128]

    d = jnp.dot(z, w3_ref[...], preferred_element_type=jnp.float32)
    d = jnp.maximum(d + b3_ref[...], 0.0).astype(jnp.bfloat16)       # [tb, 512]

    y = jnp.dot(d, w4_ref[...], preferred_element_type=jnp.float32) + b4_ref[...]
    # sigmoid(y) = 1 / (1 + exp(-y)); approx reciprocal runs on the EUP slot.
    o_ref[...] = pl.reciprocal(1.0 + jnp.exp(-y), approx=True).astype(o_ref.dtype)


def _pad2d(a, rows, cols):
    r, c = a.shape
    return jnp.pad(a, ((0, rows - r), (0, cols - c)))


def prepare_params(params):
    """Zero-pad hidden dims to lane-dense sizes; cast MXU weights to bf16.

    Padded weight rows/cols and padded bias lanes are exactly zero, so padded
    hidden lanes stay 0 after every ReLU and contribute nothing downstream.
    The K=784 input dim and N=784 output dim are left at their logical sizes.
    """
    bf, f32 = jnp.bfloat16, jnp.float32
    return dict(
        w1=_pad2d(params["w1"], N_INPUT, P_HID).astype(bf),   # [784, 512]
        b1=_pad2d(params["b1"], 1, P_HID).astype(f32),         # [1, 512]
        w2=_pad2d(params["w2"], P_HID, P_BOT).astype(bf),      # [512, 128]
        b2=_pad2d(params["b2"], 1, P_BOT).astype(f32),          # [1, 128]
        w3=_pad2d(params["w3"], P_BOT, P_HID).astype(bf),       # [128, 512]
        b3=_pad2d(params["b3"], 1, P_HID).astype(f32),          # [1, 512]
        w4=_pad2d(params["w4"], P_HID, N_OUTPUT).astype(bf),    # [512, 784]
        b4=params["b4"].astype(f32),                            # [1, 784]
    )


def _choose_tile_b(B, tile_b):
    if tile_b is None:
        if B <= 128:
            # Tiny batch: one small tile, minimal batch padding.
            tile_b = max(_BF16_SUBLANE, _round_up(B, _BF16_SUBLANE))
        else:
            # 128 fills the MXU M-dim on every generation, keeps f32
            # intermediates small (v5e), minimizes padding, and yields >= 2
            # grid steps so v7x can shard across its two TensorCores.
            tile_b = 128
    else:
        # bf16 packs 16 rows per vreg: enforce multiple-of-16 tiles, floor 16.
        tile_b = max(_BF16_SUBLANE, _round_up(tile_b, _BF16_SUBLANE))
    pb = _round_up(max(B, 1), tile_b)
    return tile_b, pb


def autoencoder_mlp4_forward(x, padded_params, *, tile_b=None,
                             out_dtype=jnp.float32):
    """x: [B, 784] float32. padded_params: output of prepare_params().

    Set out_dtype=jnp.bfloat16 if downstream tolerates it (halves the output
    HBM stream; helpful on v6e).
    """
    B = x.shape[0]
    tile_b, pb = _choose_tile_b(B, tile_b)

    # Only pad batch rows when B is not already a tile multiple.
    xp = x if pb == B else jnp.pad(x, ((0, pb - B), (0, 0)))

    p = padded_params
    const = lambda i: (0, 0)  # weights/biases stay VMEM-resident across steps

    out = pl.pallas_call(
        _mlp4_kernel,
        out_shape=jax.ShapeDtypeStruct((pb, N_OUTPUT), out_dtype),
        grid=(pb // tile_b,),
        in_specs=[
            pl.BlockSpec((tile_b, N_INPUT), lambda i: (i, 0)),  # x tile per step
            pl.BlockSpec((N_INPUT, P_HID), const),
            pl.BlockSpec((1, P_HID), const),
            pl.BlockSpec((P_HID, P_BOT), const),
            pl.BlockSpec((1, P_BOT), const),
            pl.BlockSpec((P_BOT, P_HID), const),
            pl.BlockSpec((1, P_HID), const),
            pl.BlockSpec((P_HID, N_OUTPUT), const),
            pl.BlockSpec((1, N_OUTPUT), const),
        ],
        out_specs=pl.BlockSpec((tile_b, N_OUTPUT), lambda i: (i, 0)),
        compiler_params=pltpu.CompilerParams(
            dimension_semantics=("parallel",),  # megacore sharding on v7x
            vmem_limit_bytes=24 << 20,          # ~8 MiB actual need + headroom
        ),
    )(xp, p["w1"], p["b1"], p["w2"], p["b2"], p["w3"], p["b3"], p["w4"], p["b4"])

    # Trim padded batch rows only (lanes are already the logical 784).
    return out if pb == B else out[:B]


def init_params(key):
    """PyTorch nn.Linear default init (U(-k, k), k = 1/sqrt(fan_in)).

    Weights stored pre-transposed as [in, out] (layer = x @ W + b), biases as
    [1, out] for 2D broadcasting.
    """
    dims = [(N_INPUT, N_HIDDEN), (N_HIDDEN, N_BOTTLENECK),
            (N_BOTTLENECK, N_HIDDEN), (N_HIDDEN, N_OUTPUT)]
    params = {}
    keys = jax.random.split(key, 2 * len(dims))
    for i, (fan_in, fan_out) in enumerate(dims):
        k = 1.0 / jnp.sqrt(jnp.float32(fan_in))
        params[f"w{i + 1}"] = jax.random.uniform(
            keys[2 * i], (fan_in, fan_out), minval=-k, maxval=k, dtype=jnp.float32)
        params[f"b{i + 1}"] = jax.random.uniform(
            keys[2 * i + 1], (1, fan_out), minval=-k, maxval=k, dtype=jnp.float32)
    return params


def reference_forward(x, params):
    """Pure-JAX reference matching the kernel numerics: bf16-rounded matmul
    operands, f32 accumulation, f32 elementwise, exact sigmoid."""
    def bf(a):
        return a.astype(jnp.bfloat16).astype(jnp.float32)

    hi = jax.lax.Precision.HIGHEST
    h = jnp.maximum(jnp.dot(bf(x), bf(params["w1"]), precision=hi) + params["b1"], 0.0)
    z = jnp.maximum(jnp.dot(bf(h), bf(params["w2"]), precision=hi) + params["b2"], 0.0)
    d = jnp.maximum(jnp.dot(bf(z), bf(params["w3"]), precision=hi) + params["b3"], 0.0)
    return jax.nn.sigmoid(jnp.dot(bf(d), bf(params["w4"]), precision=hi) + params["b4"])


if __name__ == "__main__":
    key = jax.random.PRNGKey(0)
    pkey, xkey1, xkey2 = jax.random.split(key, 3)

    params = init_params(pkey)
    padded_params = prepare_params(params)

    # Case 1: tiny batch of flattened 28x28 "images" (module flattens to 784).
    x_small = jax.random.uniform(xkey1, (2, N_INPUT), dtype=jnp.float32)
    out_small = jax.block_until_ready(autoencoder_mlp4_forward(x_small, padded_params))
    ref_small = reference_forward(x_small, params)
    assert out_small.shape == (2, N_OUTPUT)
    assert jnp.allclose(out_small, ref_small, atol=2e-3, rtol=2e-3), "mismatch (B=2)"

    # Case 2: multi-step batch grid + batch-row padding (20 -> 32, tile_b=16).
    x_multi = jax.random.uniform(xkey2, (20, N_INPUT), dtype=jnp.float32)
    out_multi = jax.block_until_ready(
        autoencoder_mlp4_forward(x_multi, padded_params, tile_b=16))
    ref_multi = reference_forward(x_multi, params)
    assert out_multi.shape == (20, N_OUTPUT)
    assert jnp.allclose(out_multi, ref_multi, atol=2e-3, rtol=2e-3), "mismatch (B=20)"

    print("KERNEL_OK")
</pallas_src>

<mosaic_0001>
module attributes {stable_mosaic.version = 11 : i64} {
  func.func @_mlp4_kernel(%arg0: i32, %arg1: memref<16x784xf32, #tpu.memory_space<vmem>>, %arg2: memref<784x512xbf16, #tpu.memory_space<vmem>>, %arg3: memref<1x512xf32, #tpu.memory_space<vmem>>, %arg4: memref<512x128xbf16, #tpu.memory_space<vmem>>, %arg5: memref<1x128xf32, #tpu.memory_space<vmem>>, %arg6: memref<128x512xbf16, #tpu.memory_space<vmem>>, %arg7: memref<1x512xf32, #tpu.memory_space<vmem>>, %arg8: memref<512x784xbf16, #tpu.memory_space<vmem>>, %arg9: memref<1x784xf32, #tpu.memory_space<vmem>>, %arg10: memref<16x784xf32, #tpu.memory_space<vmem>>) attributes {dimension_semantics = [#tpu.dimension_semantics<parallel>], iteration_bounds = array<i64: 1>, scalar_prefetch = 0 : i64, scratch_operands = 0 : i64, tpu.core_type = #tpu.core_type<tc>, window_params = [{transform_indices = @transform_0, window_bounds = array<i64: 16, 784>}, {pipeline_mode = #tpu.pipeline_mode<synchronous>, transform_indices = @transform_1, window_bounds = array<i64: 784, 512>}, {pipeline_mode = #tpu.pipeline_mode<synchronous>, transform_indices = @transform_2, window_bounds = array<i64: 1, 512>}, {pipeline_mode = #tpu.pipeline_mode<synchronous>, transform_indices = @transform_3, window_bounds = array<i64: 512, 128>}, {pipeline_mode = #tpu.pipeline_mode<synchronous>, transform_indices = @transform_4, window_bounds = array<i64: 1, 128>}, {pipeline_mode = #tpu.pipeline_mode<synchronous>, transform_indices = @transform_5, window_bounds = array<i64: 128, 512>}, {pipeline_mode = #tpu.pipeline_mode<synchronous>, transform_indices = @transform_6, window_bounds = array<i64: 1, 512>}, {pipeline_mode = #tpu.pipeline_mode<synchronous>, transform_indices = @transform_7, window_bounds = array<i64: 512, 784>}, {pipeline_mode = #tpu.pipeline_mode<synchronous>, transform_indices = @transform_8, window_bounds = array<i64: 1, 784>}, {transform_indices = @transform_9, window_bounds = array<i64: 16, 784>}]} {
    %c0 = arith.constant 0 : index
    %c0_0 = arith.constant 0 : index
    %0 = vector.load %arg1[%c0, %c0_0] : memref<16x784xf32, #tpu.memory_space<vmem>>, vector<16x784xf32>
    %1 = arith.truncf %0 : vector<16x784xf32> to vector<16x784xbf16>
    %c0_1 = arith.constant 0 : index
    %c0_2 = arith.constant 0 : index
    %2 = vector.load %arg2[%c0_1, %c0_2] : memref<784x512xbf16, #tpu.memory_space<vmem>>, vector<784x512xbf16>
    %cst = arith.constant dense<0.000000e+00> : vector<16x512xf32>
    %3 = tpu.matmul %1, %2, %cst {dimension_numbers = #tpu.dot_dimension_numbers<[1], [0], [0], [1], [0, 0, 1, 1], [], []>} : vector<16x784xbf16>, vector<784x512xbf16>, vector<16x512xf32> -> vector<16x512xf32>
    %c0_3 = arith.constant 0 : index
    %c0_4 = arith.constant 0 : index
    %4 = vector.load %arg3[%c0_3, %c0_4] : memref<1x512xf32, #tpu.memory_space<vmem>>, vector<1x512xf32>
    %5 = vector.broadcast %4 : vector<1x512xf32> to vector<16x512xf32>
    %6 = arith.addf %3, %5 : vector<16x512xf32>
    %cst_5 = arith.constant 0.000000e+00 : f32
    %7 = vector.broadcast %cst_5 : f32 to vector<16x512xf32>
    %8 = arith.maximumf %6, %7 : vector<16x512xf32>
    %9 = arith.truncf %8 : vector<16x512xf32> to vector<16x512xbf16>
    %c0_6 = arith.constant 0 : index
    %c0_7 = arith.constant 0 : index
    %10 = vector.load %arg4[%c0_6, %c0_7] : memref<512x128xbf16, #tpu.memory_space<vmem>>, vector<512x128xbf16>
    %cst_8 = arith.constant dense<0.000000e+00> : vector<16x128xf32>
    %11 = tpu.matmul %9, %10, %cst_8 {dimension_numbers = #tpu.dot_dimension_numbers<[1], [0], [0], [1], [0, 0, 1, 1], [], []>} : vector<16x512xbf16>, vector<512x128xbf16>, vector<16x128xf32> -> vector<16x128xf32>
    %c0_9 = arith.constant 0 : index
    %c0_10 = arith.constant 0 : index
    %12 = vector.load %arg5[%c0_9, %c0_10] : memref<1x128xf32, #tpu.memory_space<vmem>>, vector<1x128xf32>
    %13 = vector.broadcast %12 : vector<1x128xf32> to vector<16x128xf32>
    %14 = arith.addf %11, %13 : vector<16x128xf32>
    %cst_11 = arith.constant 0.000000e+00 : f32
    %15 = vector.broadcast %cst_11 : f32 to vector<16x128xf32>
    %16 = arith.maximumf %14, %15 : vector<16x128xf32>
    %17 = arith.truncf %16 : vector<16x128xf32> to vector<16x128xbf16>
    %c0_12 = arith.constant 0 : index
    %c0_13 = arith.constant 0 : index
    %18 = vector.load %arg6[%c0_12, %c0_13] : memref<128x512xbf16, #tpu.memory_space<vmem>>, vector<128x512xbf16>
    %cst_14 = arith.constant dense<0.000000e+00> : vector<16x512xf32>
    %19 = tpu.matmul %17, %18, %cst_14 {dimension_numbers = #tpu.dot_dimension_numbers<[1], [0], [0], [1], [0, 0, 1, 1], [], []>} : vector<16x128xbf16>, vector<128x512xbf16>, vector<16x512xf32> -> vector<16x512xf32>
    %c0_15 = arith.constant 0 : index
    %c0_16 = arith.constant 0 : index
    %20 = vector.load %arg7[%c0_15, %c0_16] : memref<1x512xf32, #tpu.memory_space<vmem>>, vector<1x512xf32>
    %21 = vector.broadcast %20 : vector<1x512xf32> to vector<16x512xf32>
    %22 = arith.addf %19, %21 : vector<16x512xf32>
    %cst_17 = arith.constant 0.000000e+00 : f32
    %23 = vector.broadcast %cst_17 : f32 to vector<16x512xf32>
    %24 = arith.maximumf %22, %23 : vector<16x512xf32>
    %25 = arith.truncf %24 : vector<16x512xf32> to vector<16x512xbf16>
    %c0_18 = arith.constant 0 : index
    %c0_19 = arith.constant 0 : index
    %26 = vector.load %arg8[%c0_18, %c0_19] : memref<512x784xbf16, #tpu.memory_space<vmem>>, vector<512x784xbf16>
    %cst_20 = arith.constant dense<0.000000e+00> : vector<16x784xf32>
    %27 = tpu.matmul %25, %26, %cst_20 {dimension_numbers = #tpu.dot_dimension_numbers<[1], [0], [0], [1], [0, 0, 1, 1], [], []>} : vector<16x512xbf16>, vector<512x784xbf16>, vector<16x784xf32> -> vector<16x784xf32>
    %c0_21 = arith.constant 0 : index
    %c0_22 = arith.constant 0 : index
    %28 = vector.load %arg9[%c0_21, %c0_22] : memref<1x784xf32, #tpu.memory_space<vmem>>, vector<1x784xf32>
    %29 = vector.broadcast %28 : vector<1x784xf32> to vector<16x784xf32>
    %30 = arith.addf %27, %29 : vector<16x784xf32>
    %cst_23 = arith.constant 0.000000e+00 : f32
    %31 = vector.broadcast %cst_23 : f32 to vector<16x784xf32>
    %32 = arith.subf %31, %30 : vector<16x784xf32>
    %33 = math.exp %32 : vector<16x784xf32>
    %cst_24 = arith.constant 1.000000e+00 : f32
    %34 = vector.broadcast %cst_24 : f32 to vector<16x784xf32>
    %35 = arith.addf %34, %33 : vector<16x784xf32>
    %36 = tpu.reciprocal %35 {approx = true} : vector<16x784xf32> -> vector<16x784xf32>
    %c0_25 = arith.constant 0 : index
    %c0_26 = arith.constant 0 : index
    %37 = vector.load %arg10[%c0_25, %c0_26] : memref<16x784xf32, #tpu.memory_space<vmem>>, vector<16x784xf32>
    tpu.vector_store %arg10[%c0_25, %c0_26], %36 {strides = array<i32>} : memref<16x784xf32, #tpu.memory_space<vmem>>, vector<16x784xf32>,
    return
  }
  func.func @transform_0(%arg0: i32) -> (i32, i32) {
    %c0_i32 = arith.constant 0 : i32
    %c0_i32_0 = arith.constant 0 : i32
    return %arg0, %c0_i32 : i32, i32
  }
  func.func @transform_1(%arg0: i32) -> (i32, i32) {
    %c0_i32 = arith.constant 0 : i32
    %c0_i32_0 = arith.constant 0 : i32
    %c0_i32_1 = arith.constant 0 : i32
    return %c0_i32, %c0_i32_0 : i32, i32
  }
  func.func @transform_2(%arg0: i32) -> (i32, i32) {
    %c0_i32 = arith.constant 0 : i32
    %c0_i32_0 = arith.constant 0 : i32
    %c0_i32_1 = arith.constant 0 : i32
    return %c0_i32, %c0_i32_0 : i32, i32
  }
  func.func @transform_3(%arg0: i32) -> (i32, i32) {
    %c0_i32 = arith.constant 0 : i32
    %c0_i32_0 = arith.constant 0 : i32
    %c0_i32_1 = arith.constant 0 : i32
    return %c0_i32, %c0_i32_0 : i32, i32
  }
  func.func @transform_4(%arg0: i32) -> (i32, i32) {
    %c0_i32 = arith.constant 0 : i32
    %c0_i32_0 = arith.constant 0 : i32
    %c0_i32_1 = arith.constant 0 : i32
    return %c0_i32, %c0_i32_0 : i32, i32
  }
  func.func @transform_5(%arg0: i32) -> (i32, i32) {
    %c0_i32 = arith.constant 0 : i32
    %c0_i32_0 = arith.constant 0 : i32
    %c0_i32_1 = arith.constant 0 : i32
    return %c0_i32, %c0_i32_0 : i32, i32
  }
  func.func @transform_6(%arg0: i32) -> (i32, i32) {
    %c0_i32 = arith.constant 0 : i32
    %c0_i32_0 = arith.constant 0 : i32
    %c0_i32_1 = arith.constant 0 : i32
    return %c0_i32, %c0_i32_0 : i32, i32
  }
  func.func @transform_7(%arg0: i32) -> (i32, i32) {
    %c0_i32 = arith.constant 0 : i32
    %c0_i32_0 = arith.constant 0 : i32
    %c0_i32_1 = arith.constant 0 : i32
    return %c0_i32, %c0_i32_0 : i32, i32
  }
  func.func @transform_8(%arg0: i32) -> (i32, i32) {
    %c0_i32 = arith.constant 0 : i32
    %c0_i32_0 = arith.constant 0 : i32
    %c0_i32_1 = arith.constant 0 : i32
    return %c0_i32, %c0_i32_0 : i32, i32
  }
  func.func @transform_9(%arg0: i32) -> (i32, i32) {
    %c0_i32 = arith.constant 0 : i32
    %c0_i32_0 = arith.constant 0 : i32
    return %arg0, %c0_i32 : i32, i32
  }
}

</mosaic_0001>

<bundles_post_ra>
// kernel: tpu_custom_call.1
= control target key start
LH: loop header
LB: loop body
LE: loop exit
PB: predicated region body
PF: predicated region fallthrough
CT: control target
= control target key end

     0   :  { %vm1253_vm0 = vcmask 130048   ;;  %s7209_s0 = inlined_call_operand.vmem [shape: f32[16,784], index: 0, kind: input, shape index: {}]   ;;  %s7210_s1 = inlined_call_operand.vmem [shape: bf16[784,512], index: 1, kind: input, shape index: {}]   ;;  %s7211_s2 = inlined_call_operand.vmem [shape: f32[1,512], index: 2, kind: input, shape index: {}]   ;;  %s7212_s3 = inlined_call_operand.vmem [shape: bf16[512,128], index: 3, kind: input, shape index: {}]   ;;  %s7213_s4 = inlined_call_operand.vmem [shape: f32[1,128], index: 4, kind: input, shape index: {}]   ;;  %s7214_s5 = inlined_call_operand.vmem [shape: bf16[128,512], index: 5, kind: input, shape index: {}]   ;;  %s7215_s6 = inlined_call_operand.vmem [shape: f32[1,512], index: 6, kind: input, shape index: {}]   ;;  %s7216_s7 = inlined_call_operand.vmem [shape: bf16[512,784], index: 7, kind: input, shape index: {}]   ;;  %s7217_s8 = inlined_call_operand.vmem [shape: f32[1,784], index: 8, kind: input, shape index: {}]   ;;  %s7218_s9 = inlined_call_operand.hbm [shape: f32[16,784], index: 9, kind: output, shape index: {}]  }
   0x1   :  { %v4793_v0 = vld [vmem:[%s7210_s1 + $0x4] ss:$16 sps:$4 sm:$0xff]   ;;  %v4795_v1 = vld [vmem:[%s7210_s1 + $0xc] ss:$16 sps:$4 sm:$0xff]   ;;  %v4797_v2 = vld [vmem:[%s7210_s1] ss:$16 sps:$4 sm:$0xff]  }
   0x2   :  { %1257 = vmatprep.subr.bf16.mxu0 %v4793_v0  ;;  %v4798_v3 = vld [vmem:[%s7210_s1 + $0x8] ss:$16 sps:$4 sm:$0xff]   ;;  %1429 = vmatprep.subr.bf16.mxu1 %v4795_v1  ;;  %v4799_v4 = vld [vmem:[%s7210_s1 + $0x24] ss:$16 sps:$4 sm:$0xff]   ;;  %v4801_v5 = vld [vmem:[%s7210_s1 + $0x2c] ss:$16 sps:$4 sm:$0xff]  }
   0x3   :  { %1258 = vmatpush1.bf16.msra.mxu0 %v4797_v2  ;;  %1430 = vmatpush1.bf16.msra.mxu1 %v4798_v3  ;;  %v4803_v6 = vld [vmem:[%s7210_s1 + $0x20] ss:$16 sps:$4 sm:$0xff]   ;;  %v4804_v7 = vld [vmem:[%s7210_s1 + $0x28] ss:$16 sps:$4 sm:$0xff]   ;;  %v4805_v8 = vld [vmem:[%s7210_s1 + $0x44] ss:$16 sps:$4 sm:$0xff]  }
   0x4   :  { %1259 = vmatprep.subr.bf16.mxu0 %v4799_v4  ;;  %1431 = vmatprep.subr.bf16.mxu1 %v4801_v5  ;;  %v4807_v9 = vld [vmem:[%s7210_s1 + $0x4c] ss:$16 sps:$4 sm:$0xff]   ;;  %v4809_v10 = vld [vmem:[%s7210_s1 + $0x40] ss:$16 sps:$4 sm:$0xff]   ;;  %v4810_v11 = vld [vmem:[%s7210_s1 + $0x48] ss:$16 sps:$4 sm:$0xff]  }
   0x5   :  { %v4811_v12 = vld [vmem:[%s7210_s1 + $0x64] ss:$16 sps:$4 sm:$0xff]   ;;  %v4813_v13 = vld [vmem:[%s7210_s1 + $0x6c] ss:$16 sps:$4 sm:$0xff]   ;;  %v4815_v14 = vld [vmem:[%s7210_s1 + $0x60] ss:$16 sps:$4 sm:$0xff]  }
   0x6   :  { %v4816_v15 = vld [vmem:[%s7210_s1 + $0x68] ss:$16 sps:$4 sm:$0xff]   ;;  %v4817_v16 = vld [vmem:[%s7210_s1 + $0x84] ss:$16 sps:$4 sm:$0xff]   ;;  %v4819_v17 = vld [vmem:[%s7210_s1 + $0x8c] ss:$16 sps:$4 sm:$0xff]  }
   0x7   :  { %1260 = vmatpush1.bf16.msra.mxu0 %v4803_v6  ;;  %1432 = vmatpush1.bf16.msra.mxu1 %v4804_v7  ;;  %v4821_v18 = vld [vmem:[%s7210_s1 + $0x80] ss:$16 sps:$4 sm:$0xff]   ;;  %v4822_v19 = vld [vmem:[%s7210_s1 + $0x88] ss:$16 sps:$4 sm:$0xff]   ;;  %v4823_v20 = vld [vmem:[%s7210_s1 + $0xa4] ss:$16 sps:$4 sm:$0xff]  }
   0x8   :  { %1261 = vmatprep.subr.bf16.mxu0 %v4805_v8  ;;  %1433 = vmatprep.subr.bf16.mxu1 %v4807_v9  ;;  %v4825_v21 = vld [vmem:[%s7210_s1 + $0xac] ss:$16 sps:$4 sm:$0xff]   ;;  %v4827_v22 = vld [vmem:[%s7210_s1 + $0xa0] ss:$16 sps:$4 sm:$0xff]   ;;  %v4828_v23 = vld [vmem:[%s7210_s1 + $0xa8] ss:$16 sps:$4 sm:$0xff]  }
   0x9   :  { %v4829_v24 = vld [vmem:[%s7210_s1 + $0xc4] ss:$16 sps:$4 sm:$0xff]   ;;  %v4831_v25 = vld [vmem:[%s7210_s1 + $0xcc] ss:$16 sps:$4 sm:$0xff]   ;;  %v4833_v26 = vld [vmem:[%s7210_s1 + $0xc0] ss:$16 sps:$4 sm:$0xff]  }
   0xa   :  { %v4834_v27 = vld [vmem:[%s7210_s1 + $0xc8] ss:$16 sps:$4 sm:$0xff]   ;;  %v4835_v28 = vld [vmem:[%s7210_s1 + $0xe4] ss:$16 sps:$4 sm:$0xff]   ;;  %v4837_v29 = vld [vmem:[%s7210_s1 + $0xec] ss:$16 sps:$4 sm:$0xff]  }
   0xb   :  { %1262 = vmatpush1.bf16.msra.mxu0 %v4809_v10  ;;  %1434 = vmatpush1.bf16.msra.mxu1 %v4810_v11  ;;  %v4839_v30 = vld [vmem:[%s7210_s1 + $0xe0] ss:$16 sps:$4 sm:$0xff]   ;;  %v4840_v31 = vld [vmem:[%s7210_s1 + $0xe8] ss:$16 sps:$4 sm:$0xff]   ;;  %v4841_v32 = vld [vmem:[%s7210_s1 + $0x104] ss:$16 sps:$4 sm:$0xff]  }
   0xc   :  { %1263 = vmatprep.subr.bf16.mxu0 %v4811_v12  ;;  %1435 = vmatprep.subr.bf16.mxu1 %v4813_v13  ;;  %v4843_v33 = vld [vmem:[%s7210_s1 + $0x10c] ss:$16 sps:$4 sm:$0xff]   ;;  %v4845_v34 = vld [vmem:[%s7210_s1 + $0x100] ss:$16 sps:$4 sm:$0xff]   ;;  %v4846_v35 = vld [vmem:[%s7210_s1 + $0x108] ss:$16 sps:$4 sm:$0xff]  }
   0xd   :  { %v4847_v36 = vld [vmem:[%s7210_s1 + $0x124] ss:$16 sps:$4 sm:$0xff]   ;;  %v4849_v37 = vld [vmem:[%s7210_s1 + $0x12c] ss:$16 sps:$4 sm:$0xff]   ;;  %v4851_v38 = vld [vmem:[%s7210_s1 + $0x120] ss:$16 sps:$4 sm:$0xff]  }
   0xe   :  { %v4852_v39 = vld [vmem:[%s7210_s1 + $0x128] ss:$16 sps:$4 sm:$0xff]   ;;  %v4853_v40 = vld [vmem:[%s7210_s1 + $0x144] ss:$16 sps:$4 sm:$0xff]   ;;  %v4855_v41 = vld [vmem:[%s7210_s1 + $0x14c] ss:$16 sps:$4 sm:$0xff]  }
   0xf   :  { %1264 = vmatpush1.bf16.msra.mxu0 %v4815_v14  ;;  %1436 = vmatpush1.bf16.msra.mxu1 %v4816_v15  ;;  %v4857_v42 = vld [vmem:[%s7210_s1 + $0x140] ss:$16 sps:$4 sm:$0xff]   ;;  %v4858_v43 = vld [vmem:[%s7210_s1 + $0x148] ss:$16 sps:$4 sm:$0xff]   ;;  %v4859_v44 = vld [vmem:[%s7210_s1 + $0x164] ss:$16 sps:$4 sm:$0xff]  }
  0x10   :  { %1265 = vmatprep.subr.bf16.mxu0 %v4817_v16  ;;  %1437 = vmatprep.subr.bf16.mxu1 %v4819_v17  ;;  %v4861_v45 = vld [vmem:[%s7210_s1 + $0x16c] ss:$16 sps:$4 sm:$0xff]   ;;  %v42_v47 = vld [vmem:[%s7209_s0 + $0x40] sm:$0xff]  ;;  %v4864_v49 = vld [vmem:[%s7210_s1 + $0x168] ss:$16 sps:$4 sm:$0xff]  }
  0x11   :  { %v35_v46 = vld [vmem:[%s7209_s0 + $0x8] sm:$0xff]  ;;  %v4863_v48 = vld [vmem:[%s7210_s1 + $0x160] ss:$16 sps:$4 sm:$0xff]   ;;  %v4865_v51 = vld [vmem:[%s7210_s1 + $0x184] ss:$16 sps:$4 sm:$0xff]  }
  0x12   :  { %v49_v50 = vpack.c.bf16 %v42_v47, %v35_v46  ;;  %v4867_v52 = vld [vmem:[%s7210_s1 + $0x18c] ss:$16 sps:$4 sm:$0xff]   ;;  %v4869_v53 = vld [vmem:[%s7210_s1 + $0x180] ss:$16 sps:$4 sm:$0xff]   ;;  %v4870_v54 = vld [vmem:[%s7210_s1 + $0x188] ss:$16 sps:$4 sm:$0xff]  }
  0x13   :  { %1266 = vmatpush1.bf16.msra.mxu0 %v4821_v18  ;;  %1438 = vmatpush1.bf16.msra.mxu1 %v4822_v19  ;;  %v4871_v55 = vld [vmem:[%s7210_s1 + $0x1a4] ss:$16 sps:$4 sm:$0xff]   ;;  %v4873_v56 = vld [vmem:[%s7210_s1 + $0x1ac] ss:$16 sps:$4 sm:$0xff]   ;;  %v4875_v57 = vld [vmem:[%s7210_s1 + $0x1a0] ss:$16 sps:$4 sm:$0xff]  }
  0x14   :  { %1267 = vmatprep.subr.bf16.mxu0 %v4823_v20  ;;  %1439 = vmatprep.subr.bf16.mxu1 %v4825_v21  ;;  %v4876_v58 = vld [vmem:[%s7210_s1 + $0x1a8] ss:$16 sps:$4 sm:$0xff]   ;;  %v4877_v59 = vld [vmem:[%s7210_s1 + $0x1c4] ss:$16 sps:$4 sm:$0xff]   ;;  %v4879_v60 = vld [vmem:[%s7210_s1 + $0x1cc] ss:$16 sps:$4 sm:$0xff]  }
  0x15   :  { %1289 = vmatprep.mubr.bf16.mxu0 %v49_v50  ;;  %1461 = vmatprep.mubr.bf16.mxu1 %v49_v50  ;;  %v4881_v61 = vld [vmem:[%s7210_s1 + $0x1c0] ss:$16 sps:$4 sm:$0xff]   ;;  %v4882_v62 = vld [vmem:[%s7210_s1 + $0x1c8] ss:$16 sps:$4 sm:$0xff]   ;;  %v4883_v63 = vld [vmem:[%s7210_s1 + $0x1e4] ss:$16 sps:$4 sm:$0xff]  }
  0x16   :  { %v4885_v0 = vld [vmem:[%s7210_s1 + $0x1ec] ss:$16 sps:$4 sm:$0xff]   ;;  %v4887_v1 = vld [vmem:[%s7210_s1 + $0x1e0] ss:$16 sps:$4 sm:$0xff]   ;;  %v4888_v2 = vld [vmem:[%s7210_s1 + $0x1e8] ss:$16 sps:$4 sm:$0xff]  }
  0x17   :  { %1268 = vmatpush1.bf16.msra.mxu0 %v4827_v22  ;;  %1440 = vmatpush1.bf16.msra.mxu1 %v4828_v23  ;;  %v4891_v3 = vld [vmem:[%s7210_s1 + $0x204] ss:$16 sps:$4 sm:$0xff]   ;;  %v41_v5 = vld [vmem:[%s7209_s0 + $0x38] sm:$0xff]  ;;  %v4889_v7 = vld [vmem:[%s7210_s1 + $0x200] ss:$16 sps:$4 sm:$0xff]  }
  0x18   :  { %1269 = vmatprep.subr.bf16.mxu0 %v4829_v24  ;;  %1441 = vmatprep.subr.bf16.mxu1 %v4831_v25  ;;  %v34_v4 = vld [vmem:[%s7209_s0] sm:$0xff]  ;;  %v4894_v6 = vld [vmem:[%s7210_s1 + $0x20c] ss:$16 sps:$4 sm:$0xff]   ;;  %v4892_v8 = vld [vmem:[%s7210_s1 + $0x208] ss:$16 sps:$4 sm:$0xff]  }
  0x19   :  { %v48_v9 = vpack.c.bf16 %v41_v5, %v34_v4  ;;  %v4897_v10 = vld [vmem:[%s7210_s1 + $0x224] ss:$16 sps:$4 sm:$0xff]   ;;  %v4900_v11 = vld [vmem:[%s7210_s1 + $0x22c] ss:$16 sps:$4 sm:$0xff]   ;;  %v4895_v12 = vld [vmem:[%s7210_s1 + $0x220] ss:$16 sps:$4 sm:$0xff]  }
  0x1a   :  { %v4898_v13 = vld [vmem:[%s7210_s1 + $0x228] ss:$16 sps:$4 sm:$0xff]   ;;  %v4903_v14 = vld [vmem:[%s7210_s1 + $0x244] ss:$16 sps:$4 sm:$0xff]   ;;  %v4906_v15 = vld [vmem:[%s7210_s1 + $0x24c] ss:$16 sps:$4 sm:$0xff]  }
  0x1b   :  { %1270 = vmatpush1.bf16.msra.mxu0 %v4833_v26  ;;  %1442 = vmatpush1.bf16.msra.mxu1 %v4834_v27  ;;  %v4901_v16 = vld [vmem:[%s7210_s1 + $0x240] ss:$16 sps:$4 sm:$0xff]   ;;  %v4904_v17 = vld [vmem:[%s7210_s1 + $0x248] ss:$16 sps:$4 sm:$0xff]   ;;  %v4909_v18 = vld [vmem:[%s7210_s1 + $0x264] ss:$16 sps:$4 sm:$0xff]  }
  0x1c   :  { %1271 = vmatprep.subr.bf16.mxu0 %v4835_v28  ;;  %1443 = vmatprep.subr.bf16.mxu1 %v4837_v29  ;;  %v4912_v19 = vld [vmem:[%s7210_s1 + $0x26c] ss:$16 sps:$4 sm:$0xff]   ;;  %v4907_v20 = vld [vmem:[%s7210_s1 + $0x260] ss:$16 sps:$4 sm:$0xff]   ;;  %v4910_v21 = vld [vmem:[%s7210_s1 + $0x268] ss:$16 sps:$4 sm:$0xff]  }
  0x1d   :  { %v4915_v22 = vld [vmem:[%s7210_s1 + $0x284] ss:$16 sps:$4 sm:$0xff]   ;;  %v4918_v23 = vld [vmem:[%s7210_s1 + $0x28c] ss:$16 sps:$4 sm:$0xff]   ;;  %v4913_v24 = vld [vmem:[%s7210_s1 + $0x280] ss:$16 sps:$4 sm:$0xff]  }
  0x1e   :  { %v4916_v25 = vld [vmem:[%s7210_s1 + $0x288] ss:$16 sps:$4 sm:$0xff]   ;;  %v4921_v26 = vld [vmem:[%s7210_s1 + $0x2a4] ss:$16 sps:$4 sm:$0xff]   ;;  %v4924_v27 = vld [vmem:[%s7210_s1 + $0x2ac] ss:$16 sps:$4 sm:$0xff]  }
  0x1f   :  { %1272 = vmatpush1.bf16.msra.mxu0 %v4839_v30  ;;  %1444 = vmatpush1.bf16.msra.mxu1 %v4840_v31  ;;  %v4919_v28 = vld [vmem:[%s7210_s1 + $0x2a0] ss:$16 sps:$4 sm:$0xff]   ;;  %v4922_v29 = vld [vmem:[%s7210_s1 + $0x2a8] ss:$16 sps:$4 sm:$0xff]   ;;  %v4927_v30 = vld [vmem:[%s7210_s1 + $0x2c4] ss:$16 sps:$4 sm:$0xff]  }
  0x20   :  { %1273 = vmatprep.subr.bf16.mxu0 %v4841_v32  ;;  %1445 = vmatprep.subr.bf16.mxu1 %v4843_v33  ;;  %v4930_v31 = vld [vmem:[%s7210_s1 + $0x2cc] ss:$16 sps:$4 sm:$0xff]   ;;  %v44_v33 = vld [vmem:[%s7209_s0 + $0x50] sm:$0xff]  ;;  %v4976_v4 = vld [vmem:[%s7210_s1 + $0x3c8] ss:$16 sps:$4 sm:$0xff]  }
  0x21   :  { %v37_v32 = vld [vmem:[%s7209_s0 + $0x18] sm:$0xff]  ;;  %v4943_v47 = vld [vmem:[%s7210_s1 + $0x320] ss:$16 sps:$4 sm:$0xff]   ;;  %v4981_v5 = vld [vmem:[%s7210_s1 + $0x3e4] ss:$16 sps:$4 sm:$0xff]  }
  0x22   :  { %v4948_v46 = vld [vmem:[%s7210_s1 + $0x32c] ss:$16 sps:$4 sm:$0xff]  }
  0x23   :  { %1274 = vmatpush1.bf16.msra.mxu0 %v4845_v34  ;;  %1446 = vmatpush1.bf16.msra.mxu1 %v4846_v35  ;;  %v4925_v34 = vld [vmem:[%s7210_s1 + $0x2c0] ss:$16 sps:$4 sm:$0xff]   ;;  %v4928_v35 = vld [vmem:[%s7210_s1 + $0x2c8] ss:$16 sps:$4 sm:$0xff]   ;;  %v4954_v50 = vld [vmem:[%s7210_s1 + $0x34c] ss:$16 sps:$4 sm:$0xff]  }
  0x24   :  { %1275 = vmatprep.subr.bf16.mxu0 %v4847_v36  ;;  %1447 = vmatprep.subr.bf16.mxu1 %v4849_v37  ;;  %v51_v36 = vpack.c.bf16 %v44_v33, %v37_v32  ;;  %v4933_v37 = vld [vmem:[%s7210_s1 + $0x2e4] ss:$16 sps:$4 sm:$0xff]   ;;  %v5014_v32 = vld [vmem:[%s7210_s1 + $0x48c] ss:$16 sps:$4 sm:$0xff]   ;;  %v5009_v33 = vld [vmem:[%s7210_s1 + $0x480] ss:$16 sps:$4 sm:$0xff]  }
  0x27   :  { %1276 = vmatpush1.bf16.msra.mxu0 %v4851_v38  ;;  %1448 = vmatpush1.bf16.msra.mxu1 %v4852_v39  ;;  %v4936_v38 = vld [vmem:[%s7210_s1 + $0x2ec] ss:$16 sps:$4 sm:$0xff]   ;;  %v4931_v39 = vld [vmem:[%s7210_s1 + $0x2e0] ss:$16 sps:$4 sm:$0xff]  }
  0x28   :  { %1277 = vmatprep.subr.bf16.mxu0 %v4853_v40  ;;  %1449 = vmatprep.subr.bf16.mxu1 %v4855_v41  ;;  %v4934_v40 = vld [vmem:[%s7210_s1 + $0x2e8] ss:$16 sps:$4 sm:$0xff]   ;;  %v4939_v41 = vld [vmem:[%s7210_s1 + $0x304] ss:$16 sps:$4 sm:$0xff]  }
  0x2b   :  { %1278 = vmatpush1.bf16.msra.mxu0 %v4857_v42  ;;  %1450 = vmatpush1.bf16.msra.mxu1 %v4858_v43  ;;  %v4942_v42 = vld [vmem:[%s7210_s1 + $0x30c] ss:$16 sps:$4 sm:$0xff]   ;;  %v4937_v43 = vld [vmem:[%s7210_s1 + $0x300] ss:$16 sps:$4 sm:$0xff]  }
  0x2c   :  { %1279 = vmatprep.subr.bf16.mxu0 %v4859_v44  ;;  %1451 = vmatprep.subr.bf16.mxu1 %v4861_v45  ;;  %v4940_v44 = vld [vmem:[%s7210_s1 + $0x308] ss:$16 sps:$4 sm:$0xff]   ;;  %v4945_v45 = vld [vmem:[%s7210_s1 + $0x324] ss:$16 sps:$4 sm:$0xff]  }
  0x2f   :  { %1280 = vmatpush1.bf16.msra.mxu0 %v4863_v48  ;;  %1452 = vmatpush1.bf16.msra.mxu1 %v4864_v49  ;;  %v4946_v48 = vld [vmem:[%s7210_s1 + $0x328] ss:$16 sps:$4 sm:$0xff]   ;;  %v4951_v49 = vld [vmem:[%s7210_s1 + $0x344] ss:$16 sps:$4 sm:$0xff]  }
  0x30   :  { %1281 = vmatprep.subr.bf16.mxu0 %v4865_v51  ;;  %1453 = vmatprep.subr.bf16.mxu1 %v4867_v52  ;;  %v4949_v51 = vld [vmem:[%s7210_s1 + $0x340] ss:$16 sps:$4 sm:$0xff]   ;;  %v4952_v52 = vld [vmem:[%s7210_s1 + $0x348] ss:$16 sps:$4 sm:$0xff]  }
  0x33   :  { %1282 = vmatpush1.bf16.msra.mxu0 %v4869_v53  ;;  %1454 = vmatpush1.bf16.msra.mxu1 %v4870_v54  ;;  %v4957_v53 = vld [vmem:[%s7210_s1 + $0x364] ss:$16 sps:$4 sm:$0xff]   ;;  %v4960_v54 = vld [vmem:[%s7210_s1 + $0x36c] ss:$16 sps:$4 sm:$0xff]  }
  0x34   :  { %1283 = vmatprep.subr.bf16.mxu0 %v4871_v55  ;;  %1455 = vmatprep.subr.bf16.mxu1 %v4873_v56  ;;  %v4955_v55 = vld [vmem:[%s7210_s1 + $0x360] ss:$16 sps:$4 sm:$0xff]   ;;  %v4958_v56 = vld [vmem:[%s7210_s1 + $0x368] ss:$16 sps:$4 sm:$0xff]  }
  0x37   :  { %1284 = vmatpush1.bf16.msra.mxu0 %v4875_v57  ;;  %1456 = vmatpush1.bf16.msra.mxu1 %v4876_v58  ;;  %v4963_v57 = vld [vmem:[%s7210_s1 + $0x384] ss:$16 sps:$4 sm:$0xff]   ;;  %v4966_v58 = vld [vmem:[%s7210_s1 + $0x38c] ss:$16 sps:$4 sm:$0xff]  }
  0x38   :  { %1285 = vmatprep.subr.bf16.mxu0 %v4877_v59  ;;  %1457 = vmatprep.subr.bf16.mxu1 %v4879_v60  ;;  %v4961_v59 = vld [vmem:[%s7210_s1 + $0x380] ss:$16 sps:$4 sm:$0xff]   ;;  %v4964_v60 = vld [vmem:[%s7210_s1 + $0x388] ss:$16 sps:$4 sm:$0xff]  }
  0x3b   :  { %1286 = vmatpush1.bf16.msra.mxu0 %v4881_v61  ;;  %1458 = vmatpush1.bf16.msra.mxu1 %v4882_v62  ;;  %v4969_v61 = vld [vmem:[%s7210_s1 + $0x3a4] ss:$16 sps:$4 sm:$0xff]   ;;  %v4972_v62 = vld [vmem:[%s7210_s1 + $0x3ac] ss:$16 sps:$4 sm:$0xff]  }
  0x3c   :  { %1287 = vmatprep.subr.bf16.mxu0 %v4883_v63  ;;  %1459 = vmatprep.subr.bf16.mxu1 %v4885_v0  ;;  %v4967_v63 = vld [vmem:[%s7210_s1 + $0x3a0] ss:$16 sps:$4 sm:$0xff]   ;;  %v4970_v0 = vld [vmem:[%s7210_s1 + $0x3a8] ss:$16 sps:$4 sm:$0xff]  }
  0x3f   :  { %1288 = vmatpush1.bf16.msra.mxu0 %v4887_v1  ;;  %1460 = vmatpush1.bf16.msra.mxu1 %v4888_v2  ;;  %v4975_v1 = vld [vmem:[%s7210_s1 + $0x3c4] ss:$16 sps:$4 sm:$0xff]   ;;  %v4978_v2 = vld [vmem:[%s7210_s1 + $0x3cc] ss:$16 sps:$4 sm:$0xff]  }
  0x40   :  { %1300 = vmatprep.subr.bf16.mxu0 %v4891_v3  ;;  %1472 = vmatprep.subr.bf16.mxu1 %v4894_v6  ;;  %v4973_v3 = vld [vmem:[%s7210_s1 + $0x3c0] ss:$16 sps:$4 sm:$0xff]   ;;  %v4984_v6 = vld [vmem:[%s7210_s1 + $0x3ec] ss:$16 sps:$4 sm:$0xff]  }
  0x42   :  { %1290 = vmatmul.mubr.bf16.vlgmr.msra.gmra.mrb[0].mxu0 %v48_v9  ;;  %1462 = vmatmul.mubr.bf16.vlgmr.msra.gmra.mrb[0].mxu1 %v48_v9  ;;  %v4987_v9 = vld [vmem:[%s7210_s1 + $0x404] ss:$16 sps:$4 sm:$0xff]  }
  0x43   :  { %1301 = vmatpush1.bf16.msra.mxu0 %v4889_v7  ;;  %1473 = vmatpush1.bf16.msra.mxu1 %v4892_v8  ;;  %v4979_v7 = vld [vmem:[%s7210_s1 + $0x3e0] ss:$16 sps:$4 sm:$0xff]   ;;  %v4982_v8 = vld [vmem:[%s7210_s1 + $0x3e8] ss:$16 sps:$4 sm:$0xff]  }
  0x44   :  { %1302 = vmatprep.subr.bf16.mxu0 %v4897_v10  ;;  %1474 = vmatprep.subr.bf16.mxu1 %v4900_v11  ;;  %v36_v10 = vld [vmem:[%s7209_s0 + $0x10] sm:$0xff]  ;;  %v43_v11 = vld [vmem:[%s7209_s0 + $0x48] sm:$0xff] }
  0x45   :  { %1332 = vmatprep.mubr.bf16.mxu0 %v51_v36  ;;  %1504 = vmatprep.mubr.bf16.mxu1 %v51_v36  ;;  %v5020_v36 = vld [vmem:[%s7210_s1 + $0x4ac] ss:$16 sps:$4 sm:$0xff]  }
  0x47   :  { %1303 = vmatpush1.bf16.msra.mxu0 %v4895_v12  ;;  %1475 = vmatpush1.bf16.msra.mxu1 %v4898_v13  ;;  %v4990_v12 = vld [vmem:[%s7210_s1 + $0x40c] ss:$16 sps:$4 sm:$0xff]   ;;  %v4985_v13 = vld [vmem:[%s7210_s1 + $0x400] ss:$16 sps:$4 sm:$0xff]  }
  0x48   :  { %1304 = vmatprep.subr.bf16.mxu0 %v4903_v14  ;;  %1476 = vmatprep.subr.bf16.mxu1 %v4906_v15  ;;  %v4988_v14 = vld [vmem:[%s7210_s1 + $0x408] ss:$16 sps:$4 sm:$0xff]   ;;  %v50_v15 = vpack.c.bf16 %v43_v11, %v36_v10  ;;  %v5077_v11 = vld [vmem:[%s7210_s1 + $0x5e4] ss:$16 sps:$4 sm:$0xff]  }
  0x49   :  { %v5072_v10 = vld [vmem:[%s7210_s1 + $0x5c8] ss:$16 sps:$4 sm:$0xff]  }
  0x4b   :  { %1305 = vmatpush1.bf16.msra.mxu0 %v4901_v16  ;;  %1477 = vmatpush1.bf16.msra.mxu1 %v4904_v17  ;;  %v4993_v16 = vld [vmem:[%s7210_s1 + $0x424] ss:$16 sps:$4 sm:$0xff]   ;;  %v4996_v17 = vld [vmem:[%s7210_s1 + $0x42c] ss:$16 sps:$4 sm:$0xff]  }
  0x4c   :  { %1306 = vmatprep.subr.bf16.mxu0 %v4909_v18  ;;  %1478 = vmatprep.subr.bf16.mxu1 %v4912_v19  ;;  %v39_v18 = vld [vmem:[%s7209_s0 + $0x28] sm:$0xff]  ;;  %v4991_v19 = vld [vmem:[%s7210_s1 + $0x420] ss:$16 sps:$4 sm:$0xff]  }
  0x4f   :  { %1307 = vmatpush1.bf16.msra.mxu0 %v4907_v20  ;;  %1479 = vmatpush1.bf16.msra.mxu1 %v4910_v21  ;;  %v4994_v20 = vld [vmem:[%s7210_s1 + $0x428] ss:$16 sps:$4 sm:$0xff]   ;;  %v46_v21 = vld [vmem:[%s7209_s0 + $0x60] sm:$0xff] }
  0x50   :  { %1308 = vmatprep.subr.bf16.mxu0 %v4915_v22  ;;  %1480 = vmatprep.subr.bf16.mxu1 %v4918_v23  ;;  %v4999_v22 = vld [vmem:[%s7210_s1 + $0x444] ss:$16 sps:$4 sm:$0xff]   ;;  %v53_v23 = vpack.c.bf16 %v46_v21, %v39_v18  ;;  %v5086_v18 = vld [vmem:[%s7210_s1 + $0x60c] ss:$16 sps:$4 sm:$0xff]  }
  0x53   :  { %1309 = vmatpush1.bf16.msra.mxu0 %v4913_v24  ;;  %1481 = vmatpush1.bf16.msra.mxu1 %v4916_v25  ;;  %v5002_v24 = vld [vmem:[%s7210_s1 + $0x44c] ss:$16 sps:$4 sm:$0xff]   ;;  %v4997_v25 = vld [vmem:[%s7210_s1 + $0x440] ss:$16 sps:$4 sm:$0xff]  }
  0x54   :  { %1310 = vmatprep.subr.bf16.mxu0 %v4921_v26  ;;  %1482 = vmatprep.subr.bf16.mxu1 %v4924_v27  ;;  %v5000_v26 = vld [vmem:[%s7210_s1 + $0x448] ss:$16 sps:$4 sm:$0xff]   ;;  %v5005_v27 = vld [vmem:[%s7210_s1 + $0x464] ss:$16 sps:$4 sm:$0xff]  }
  0x57   :  { %1311 = vmatpush1.bf16.msra.mxu0 %v4919_v28  ;;  %1483 = vmatpush1.bf16.msra.mxu1 %v4922_v29  ;;  %v5008_v28 = vld [vmem:[%s7210_s1 + $0x46c] ss:$16 sps:$4 sm:$0xff]   ;;  %v5003_v29 = vld [vmem:[%s7210_s1 + $0x460] ss:$16 sps:$4 sm:$0xff]  }
  0x58   :  { %1312 = vmatprep.subr.bf16.mxu0 %v4927_v30  ;;  %1484 = vmatprep.subr.bf16.mxu1 %v4930_v31  ;;  %v5006_v30 = vld [vmem:[%s7210_s1 + $0x468] ss:$16 sps:$4 sm:$0xff]   ;;  %v5011_v31 = vld [vmem:[%s7210_s1 + $0x484] ss:$16 sps:$4 sm:$0xff]  }
  0x5b   :  { %1313 = vmatpush1.bf16.msra.mxu0 %v4925_v34  ;;  %1485 = vmatpush1.bf16.msra.mxu1 %v4928_v35  ;;  %v5012_v34 = vld [vmem:[%s7210_s1 + $0x488] ss:$16 sps:$4 sm:$0xff]   ;;  %v5017_v35 = vld [vmem:[%s7210_s1 + $0x4a4] ss:$16 sps:$4 sm:$0xff]  }
  0x5c   :  { %1314 = vmatprep.subr.bf16.mxu0 %v4933_v37  ;;  %1486 = vmatprep.subr.bf16.mxu1 %v4936_v38  ;;  %v5015_v37 = vld [vmem:[%s7210_s1 + $0x4a0] ss:$16 sps:$4 sm:$0xff]   ;;  %v5018_v38 = vld [vmem:[%s7210_s1 + $0x4a8] ss:$16 sps:$4 sm:$0xff]  }
  0x5f   :  { %1315 = vmatpush1.bf16.msra.mxu0 %v4931_v39  ;;  %1487 = vmatpush1.bf16.msra.mxu1 %v4934_v40  ;;  %v5023_v39 = vld [vmem:[%s7210_s1 + $0x4c4] ss:$16 sps:$4 sm:$0xff]   ;;  %v5026_v40 = vld [vmem:[%s7210_s1 + $0x4cc] ss:$16 sps:$4 sm:$0xff]  }
  0x60   :  { %1316 = vmatprep.subr.bf16.mxu0 %v4939_v41  ;;  %1488 = vmatprep.subr.bf16.mxu1 %v4942_v42  ;;  %v5021_v41 = vld [vmem:[%s7210_s1 + $0x4c0] ss:$16 sps:$4 sm:$0xff]   ;;  %v5024_v42 = vld [vmem:[%s7210_s1 + $0x4c8] ss:$16 sps:$4 sm:$0xff]  }
  0x63   :  { %1317 = vmatpush1.bf16.msra.mxu0 %v4937_v43  ;;  %1489 = vmatpush1.bf16.msra.mxu1 %v4940_v44  ;;  %v5029_v43 = vld [vmem:[%s7210_s1 + $0x4e4] ss:$16 sps:$4 sm:$0xff]   ;;  %v5032_v44 = vld [vmem:[%s7210_s1 + $0x4ec] ss:$16 sps:$4 sm:$0xff]  }
  0x64   :  { %1318 = vmatprep.subr.bf16.mxu0 %v4945_v45  ;;  %1490 = vmatprep.subr.bf16.mxu1 %v4948_v46  ;;  %v5027_v45 = vld [vmem:[%s7210_s1 + $0x4e0] ss:$16 sps:$4 sm:$0xff]   ;;  %v5030_v46 = vld [vmem:[%s7210_s1 + $0x4e8] ss:$16 sps:$4 sm:$0xff]  }
  0x67   :  { %1319 = vmatpush1.bf16.msra.mxu0 %v4943_v47  ;;  %1491 = vmatpush1.bf16.msra.mxu1 %v4946_v48  ;;  %v5035_v47 = vld [vmem:[%s7210_s1 + $0x504] ss:$16 sps:$4 sm:$0xff]   ;;  %v5038_v48 = vld [vmem:[%s7210_s1 + $0x50c] ss:$16 sps:$4 sm:$0xff]  }
  0x68   :  { %1320 = vmatprep.subr.bf16.mxu0 %v4951_v49  ;;  %1492 = vmatprep.subr.bf16.mxu1 %v4954_v50  ;;  %v5033_v49 = vld [vmem:[%s7210_s1 + $0x500] ss:$16 sps:$4 sm:$0xff]   ;;  %v5036_v50 = vld [vmem:[%s7210_s1 + $0x508] ss:$16 sps:$4 sm:$0xff]  }
  0x6b   :  { %1321 = vmatpush1.bf16.msra.mxu0 %v4949_v51  ;;  %1493 = vmatpush1.bf16.msra.mxu1 %v4952_v52  ;;  %v5041_v51 = vld [vmem:[%s7210_s1 + $0x524] ss:$16 sps:$4 sm:$0xff]   ;;  %v5044_v52 = vld [vmem:[%s7210_s1 + $0x52c] ss:$16 sps:$4 sm:$0xff]  }
  0x6c   :  { %1322 = vmatprep.subr.bf16.mxu0 %v4957_v53  ;;  %1494 = vmatprep.subr.bf16.mxu1 %v4960_v54  ;;  %v5039_v53 = vld [vmem:[%s7210_s1 + $0x520] ss:$16 sps:$4 sm:$0xff]   ;;  %v5042_v54 = vld [vmem:[%s7210_s1 + $0x528] ss:$16 sps:$4 sm:$0xff]  }
  0x6f   :  { %1323 = vmatpush1.bf16.msra.mxu0 %v4955_v55  ;;  %1495 = vmatpush1.bf16.msra.mxu1 %v4958_v56  ;;  %v5047_v55 = vld [vmem:[%s7210_s1 + $0x544] ss:$16 sps:$4 sm:$0xff]   ;;  %v5050_v56 = vld [vmem:[%s7210_s1 + $0x54c] ss:$16 sps:$4 sm:$0xff]  }
  0x70   :  { %1324 = vmatprep.subr.bf16.mxu0 %v4963_v57  ;;  %1496 = vmatprep.subr.bf16.mxu1 %v4966_v58  ;;  %v5045_v57 = vld [vmem:[%s7210_s1 + $0x540] ss:$16 sps:$4 sm:$0xff]   ;;  %v5048_v58 = vld [vmem:[%s7210_s1 + $0x548] ss:$16 sps:$4 sm:$0xff]  }
  0x73   :  { %1325 = vmatpush1.bf16.msra.mxu0 %v4961_v59  ;;  %1497 = vmatpush1.bf16.msra.mxu1 %v4964_v60  ;;  %v5053_v59 = vld [vmem:[%s7210_s1 + $0x564] ss:$16 sps:$4 sm:$0xff]   ;;  %v5056_v60 = vld [vmem:[%s7210_s1 + $0x56c] ss:$16 sps:$4 sm:$0xff]  }
  0x74   :  { %1326 = vmatprep.subr.bf16.mxu0 %v4969_v61  ;;  %1498 = vmatprep.subr.bf16.mxu1 %v4972_v62  ;;  %v5051_v61 = vld [vmem:[%s7210_s1 + $0x560] ss:$16 sps:$4 sm:$0xff]   ;;  %v5054_v62 = vld [vmem:[%s7210_s1 + $0x568] ss:$16 sps:$4 sm:$0xff]  }
  0x77   :  { %1327 = vmatpush1.bf16.msra.mxu0 %v4967_v63  ;;  %1499 = vmatpush1.bf16.msra.mxu1 %v4970_v0  ;;  %v5059_v63 = vld [vmem:[%s7210_s1 + $0x584] ss:$16 sps:$4 sm:$0xff]   ;;  %v5062_v0 = vld [vmem:[%s7210_s1 + $0x58c] ss:$16 sps:$4 sm:$0xff]  }
  0x78   :  { %1328 = vmatprep.subr.bf16.mxu0 %v4975_v1  ;;  %1500 = vmatprep.subr.bf16.mxu1 %v4978_v2  ;;  %v5057_v1 = vld [vmem:[%s7210_s1 + $0x580] ss:$16 sps:$4 sm:$0xff]   ;;  %v5060_v2 = vld [vmem:[%s7210_s1 + $0x588] ss:$16 sps:$4 sm:$0xff]  }
  0x7b   :  { %1329 = vmatpush1.bf16.msra.mxu0 %v4973_v3  ;;  %1501 = vmatpush1.bf16.msra.mxu1 %v4976_v4  ;;  %v5065_v3 = vld [vmem:[%s7210_s1 + $0x5a4] ss:$16 sps:$4 sm:$0xff]   ;;  %v5068_v4 = vld [vmem:[%s7210_s1 + $0x5ac] ss:$16 sps:$4 sm:$0xff]  }
  0x7c   :  { %1330 = vmatprep.subr.bf16.mxu0 %v4981_v5  ;;  %1502 = vmatprep.subr.bf16.mxu1 %v4984_v6  ;;  %v5063_v5 = vld [vmem:[%s7210_s1 + $0x5a0] ss:$16 sps:$4 sm:$0xff]   ;;  %v5066_v6 = vld [vmem:[%s7210_s1 + $0x5a8] ss:$16 sps:$4 sm:$0xff]  }
  0x7f   :  { %1331 = vmatpush1.bf16.msra.mxu0 %v4979_v7  ;;  %1503 = vmatpush1.bf16.msra.mxu1 %v4982_v8  ;;  %v5071_v7 = vld [vmem:[%s7210_s1 + $0x5c4] ss:$16 sps:$4 sm:$0xff]   ;;  %v5074_v8 = vld [vmem:[%s7210_s1 + $0x5cc] ss:$16 sps:$4 sm:$0xff]  }
  0x80   :  { %1343 = vmatprep.subr.bf16.mxu0 %v4987_v9  ;;  %1515 = vmatprep.subr.bf16.mxu1 %v4990_v12  ;;  %v5069_v9 = vld [vmem:[%s7210_s1 + $0x5c0] ss:$16 sps:$4 sm:$0xff]   ;;  %v5080_v12 = vld [vmem:[%s7210_s1 + $0x5ec] ss:$16 sps:$4 sm:$0xff]  }
  0x82   :  { %1333 = vmatmul.mubr.bf16.vlgmr.msra.gmra.mrb[0].mxu0 %v50_v15  ;;  %1505 = vmatmul.mubr.bf16.vlgmr.msra.gmra.mrb[0].mxu1 %v50_v15  ;;  %v38_v15 = vld [vmem:[%s7209_s0 + $0x20] sm:$0xff] }
  0x83   :  { %1344 = vmatpush1.bf16.msra.mxu0 %v4985_v13  ;;  %1516 = vmatpush1.bf16.msra.mxu1 %v4988_v14  ;;  %v5075_v13 = vld [vmem:[%s7210_s1 + $0x5e0] ss:$16 sps:$4 sm:$0xff]   ;;  %v5078_v14 = vld [vmem:[%s7210_s1 + $0x5e8] ss:$16 sps:$4 sm:$0xff]  }
  0x84   :  { %1345 = vmatprep.subr.bf16.mxu0 %v4993_v16  ;;  %1517 = vmatprep.subr.bf16.mxu1 %v4996_v17  ;;  %v45_v16 = vld [vmem:[%s7209_s0 + $0x58] sm:$0xff]  ;;  %v5083_v17 = vld [vmem:[%s7210_s1 + $0x604] ss:$16 sps:$4 sm:$0xff]  }
  0x85   :  { %1375 = vmatprep.mubr.bf16.mxu0 %v53_v23  ;;  %1547 = vmatprep.mubr.bf16.mxu1 %v53_v23  ;;  %v52_v21 = vpack.c.bf16 %v45_v16, %v38_v15  ;;  %v5567_v23 = vmov 0  }
  0x87   :  { %1346 = vmatpush1.bf16.msra.mxu0 %v4991_v19  ;;  %1518 = vmatpush1.bf16.msra.mxu1 %v4994_v20  ;;  %v5081_v19 = vld [vmem:[%s7210_s1 + $0x600] ss:$16 sps:$4 sm:$0xff]   ;;  %v5084_v20 = vld [vmem:[%s7210_s1 + $0x608] ss:$16 sps:$4 sm:$0xff]  }
  0x88   :  { %1347 = vmatprep.subr.bf16.mxu0 %v4999_v22  ;;  %1519 = vmatprep.subr.bf16.mxu1 %v5002_v24  ;;  %v5087_v22 = vld [vmem:[%s7212_s3 + $0x40] sm:$0xff]   ;;  %v40_v24 = vld [vmem:[%s7209_s0 + $0x30] sm:$0xff] }
  0x8b   :  { %1348 = vmatpush1.bf16.msra.mxu0 %v4997_v25  ;;  %1520 = vmatpush1.bf16.msra.mxu1 %v5000_v26  ;;  %v47_v25 = vld [vmem:[%s7209_s0 + $0x68] sm:$0xff]  ;;  %v5088_v26 = vld [vmem:[%s7212_s3] sm:$0xff]  }
  0x8c   :  { %1349 = vmatprep.subr.bf16.mxu0 %v5005_v27  ;;  %1521 = vmatprep.subr.bf16.mxu1 %v5008_v28  ;;  %v54_v27 = vpack.c.bf16 %v47_v25, %v40_v24  ;;  %v5089_v28 = vld [vmem:[%s7212_s3 + $0x48] sm:$0xff]  }
  0x8f   :  { %1350 = vmatpush1.bf16.msra.mxu0 %v5003_v29  ;;  %1522 = vmatpush1.bf16.msra.mxu1 %v5006_v30  ;;  %v5090_v29 = vld [vmem:[%s7212_s3 + $0x8] sm:$0xff]   ;;  %v5091_v30 = vld [vmem:[%s7212_s3 + $0x50] sm:$0xff]  }
  0x90   :  { %1351 = vmatprep.subr.bf16.mxu0 %v5011_v31  ;;  %1523 = vmatprep.subr.bf16.mxu1 %v5014_v32  ;;  %v5092_v31 = vld [vmem:[%s7212_s3 + $0x10] sm:$0xff]   ;;  %v5093_v32 = vld [vmem:[%s7212_s3 + $0x58] sm:$0xff]  }
  0x93   :  { %1352 = vmatpush1.bf16.msra.mxu0 %v5009_v33  ;;  %1524 = vmatpush1.bf16.msra.mxu1 %v5012_v34  ;;  %v5094_v33 = vld [vmem:[%s7212_s3 + $0x18] sm:$0xff]   ;;  %v5095_v34 = vld [vmem:[%s7212_s3 + $0x60] sm:$0xff]  }
  0x94   :  { %1353 = vmatprep.subr.bf16.mxu0 %v5017_v35  ;;  %1525 = vmatprep.subr.bf16.mxu1 %v5020_v36  ;;  %v5096_v35 = vld [vmem:[%s7212_s3 + $0x20] sm:$0xff]   ;;  %v5097_v36 = vld [vmem:[%s7212_s3 + $0x68] sm:$0xff]  }
  0x97   :  { %1354 = vmatpush1.bf16.msra.mxu0 %v5015_v37  ;;  %1526 = vmatpush1.bf16.msra.mxu1 %v5018_v38  ;;  %v5098_v37 = vld [vmem:[%s7212_s3 + $0x28] sm:$0xff]  }
  0x98   :  { %1355 = vmatprep.subr.bf16.mxu0 %v5023_v39  ;;  %1527 = vmatprep.subr.bf16.mxu1 %v5026_v40 }
  0x9b   :  { %1356 = vmatpush1.bf16.msra.mxu0 %v5021_v41  ;;  %1528 = vmatpush1.bf16.msra.mxu1 %v5024_v42 }
  0x9c   :  { %1357 = vmatprep.subr.bf16.mxu0 %v5029_v43  ;;  %1529 = vmatprep.subr.bf16.mxu1 %v5032_v44 }
  0x9f   :  { %1358 = vmatpush1.bf16.msra.mxu0 %v5027_v45  ;;  %1530 = vmatpush1.bf16.msra.mxu1 %v5030_v46 }
  0xa0   :  { %1359 = vmatprep.subr.bf16.mxu0 %v5035_v47  ;;  %1531 = vmatprep.subr.bf16.mxu1 %v5038_v48 }
  0xa3   :  { %1360 = vmatpush1.bf16.msra.mxu0 %v5033_v49  ;;  %1532 = vmatpush1.bf16.msra.mxu1 %v5036_v50 }
  0xa4   :  { %1361 = vmatprep.subr.bf16.mxu0 %v5041_v51  ;;  %1533 = vmatprep.subr.bf16.mxu1 %v5044_v52 }
  0xa7   :  { %1362 = vmatpush1.bf16.msra.mxu0 %v5039_v53  ;;  %1534 = vmatpush1.bf16.msra.mxu1 %v5042_v54 }
  0xa8   :  { %1363 = vmatprep.subr.bf16.mxu0 %v5047_v55  ;;  %1535 = vmatprep.subr.bf16.mxu1 %v5050_v56 }
  0xab   :  { %1364 = vmatpush1.bf16.msra.mxu0 %v5045_v57  ;;  %1536 = vmatpush1.bf16.msra.mxu1 %v5048_v58 }
  0xac   :  { %1365 = vmatprep.subr.bf16.mxu0 %v5053_v59  ;;  %1537 = vmatprep.subr.bf16.mxu1 %v5056_v60 }
  0xaf   :  { %1366 = vmatpush1.bf16.msra.mxu0 %v5051_v61  ;;  %1538 = vmatpush1.bf16.msra.mxu1 %v5054_v62 }
  0xb0   :  { %1367 = vmatprep.subr.bf16.mxu0 %v5059_v63  ;;  %1539 = vmatprep.subr.bf16.mxu1 %v5062_v0 }
  0xb3   :  { %1368 = vmatpush1.bf16.msra.mxu0 %v5057_v1  ;;  %1540 = vmatpush1.bf16.msra.mxu1 %v5060_v2 }
  0xb4   :  { %1369 = vmatprep.subr.bf16.mxu0 %v5065_v3  ;;  %1541 = vmatprep.subr.bf16.mxu1 %v5068_v4 }
  0xb7   :  { %1370 = vmatpush1.bf16.msra.mxu0 %v5063_v5  ;;  %1542 = vmatpush1.bf16.msra.mxu1 %v5066_v6 }
  0xb8   :  { %1371 = vmatprep.subr.bf16.mxu0 %v5071_v7  ;;  %1543 = vmatprep.subr.bf16.mxu1 %v5074_v8 }
  0xbb   :  { %1372 = vmatpush1.bf16.msra.mxu0 %v5069_v9  ;;  %1544 = vmatpush1.bf16.msra.mxu1 %v5072_v10 }
  0xbc   :  { %1373 = vmatprep.subr.bf16.mxu0 %v5077_v11  ;;  %1545 = vmatprep.subr.bf16.mxu1 %v5080_v12 }
  0xbf   :  { %1374 = vmatpush1.bf16.msra.mxu0 %v5075_v13  ;;  %1546 = vmatpush1.bf16.msra.mxu1 %v5078_v14 }
  0xc0   :  { %1386 = vmatprep.subr.bf16.mxu0 %v5083_v17  ;;  %1558 = vmatprep.subr.bf16.mxu1 %v5086_v18 }
  0xc2   :  { %1376 = vmatmul.mubr.bf16.vlgmr.msra.gmra.mrb[0].mxu0 %v52_v21  ;;  %1548 = vmatmul.mubr.bf16.vlgmr.msra.gmra.mrb[0].mxu1 %v52_v21 }
  0xc3   :  { %1387 = vmatpush1.bf16.msra.mxu0 %v5081_v19  ;;  %1559 = vmatpush1.bf16.msra.mxu1 %v5084_v20 }
  0xc4   :  { %1418 = vmatprep.mubr.bf16.mxu0 %v5567_v23  ;;  %1590 = vmatprep.mubr.bf16.mxu1 %v5567_v23 }
  0xc5   :  { %4645 = vmatprep.subr.bf16.mxu1 %v5087_v22 }
  0xce   :  { %4354 = vmatmul.mubr.msk.bf16.vlgmr.msra.gmra.mrb[0].mxu0 %vm1253_vm0, %v54_v27  ;;  %4355 = vmatmul.mubr.msk.bf16.vlgmr.msra.gmra.mrb[0].mxu1 %vm1253_vm0, %v54_v27 }
  0xcf   :  { %4646 = vmatpush3.bf16.msra.mxu1 %v5088_v26  ;;  %2207 = vmatprep.mubr.bf16.mxu0 %v5567_v23 }
  0xd0   :  { %4647 = vmatprep.subr.bf16.mxu1 %v5089_v28 }
  0xd3   :  { %4648 = vmatpush3.bf16.msra.mxu1 %v5090_v29 }
  0xd4   :  { %4649 = vmatprep.subr.bf16.mxu1 %v5091_v30 }
  0xd7   :  { %4650 = vmatpush3.bf16.msra.mxu1 %v5092_v31 }
  0xd8   :  { %4651 = vmatprep.subr.bf16.mxu1 %v5093_v32 }
  0xdb   :  { %4652 = vmatpush3.bf16.msra.mxu1 %v5094_v33 }
  0xdc   :  { %4653 = vmatprep.subr.bf16.mxu1 %v5095_v34 }
  0xdf   :  { %4654 = vmatpush3.bf16.msra.mxu1 %v5096_v35 }
  0xe0   :  { %4655 = vmatprep.subr.bf16.mxu1 %v5097_v36 }
  0xe3   :  { %4656 = vmatpush3.bf16.msra.mxu1 %v5098_v37 }
  0xe4   :  { %14 = vsyncpa [#allocation3], 0  ;;  %v5099_v38 = vld [vmem:[%s7212_s3 + $0x70] sm:$0xff]   ;;  %v5101_v40 = vld [vmem:[%s7212_s3 + $0x78] sm:$0xff]   ;;  %v253_v43 = vlaneseq }
  0xe5   :  { %v5100_v39 = vld [vmem:[%s7212_s3 + $0x30] sm:$0xff]   ;;  %4657 = vmatprep.subr.bf16.mxu1 %v5099_v38  ;;  %v5102_v41 = vld [vmem:[%s7212_s3 + $0x38] sm:$0xff]   ;;  %v5103_v42 = vld [vmem:[%s7212_s3 + $0xc0] sm:$0xff]  }
  0xe6   :  { %v6307_v44 = vshrl.u32 %v253_v43, 7  ;;  %v251_v47 = vld [vmem:[%s7211_s2] sm:$0xf]  ;;  %v5105_v19 = vld [vmem:[%s7212_s3 + $0xc8] sm:$0xff]   ;;  %v5107_v21 = vld [vmem:[%s7212_s3 + $0xd0] sm:$0xff]  }
  0xe7   :  { %4658 = vmatpush3.bf16.msra.mxu1 %v5100_v39  ;;  %v5104_v18 = vld [vmem:[%s7212_s3 + $0x80] sm:$0xff]   ;;  %v5106_v20 = vld [vmem:[%s7212_s3 + $0x88] sm:$0xff]   ;;  %v5108_v22 = vld [vmem:[%s7212_s3 + $0x90] sm:$0xff]  }
  0xe8   :  { %4659 = vmatprep.subr.bf16.mxu1 %v5101_v40  ;;  %v6310_v45 = vsub.s32 0, %v6307_v44  ;;  %v6313_v46 = vsub.s32 2, %v6307_v44  ;;  %v6319_v48 = vsub.s32 1, %v6307_v44  ;;  %v6322_v49 = vsub.s32 3, %v6307_v44  ;;  %v5109_v24 = vld [vmem:[%s7212_s3 + $0xd8] sm:$0xff]   ;;  %v5111_v26 = vld [vmem:[%s7212_s3 + $0xe0] sm:$0xff]  }
  0xe9   :  { %v5110_v25 = vld [vmem:[%s7212_s3 + $0x98] sm:$0xff]   ;;  %v5112_v27 = vld [vmem:[%s7212_s3 + $0xa0] sm:$0xff]   ;;  %v5113_v28 = vld [vmem:[%s7212_s3 + $0xe8] sm:$0xff]  }
  0xea   :  { %v256_v50 = vrot.slane %v251_v47, %v6310_v45  ;;  %v264_v51 = vrot.slane %v251_v47, %v6313_v46  ;;  %v260_v52 = vrot.slane %v251_v47, %v6319_v48  ;;  %v268_v53 = vrot.slane %v251_v47, %v6322_v49  ;;  %v5114_v29 = vld [vmem:[%s7212_s3 + $0xa8] sm:$0xff]   ;;  %v5115_v30 = vld [vmem:[%s7212_s3 + $0xf0] sm:$0xff]   ;;  %v5117_v32 = vld [vmem:[%s7212_s3 + $0xf8] sm:$0xff]  }
  0xeb   :  { %4660 = vmatpush3.bf16.msra.mxu1 %v5102_v41  ;;  %v5116_v31 = vld [vmem:[%s7212_s3 + $0xb0] sm:$0xff]   ;;  %v5118_v33 = vld [vmem:[%s7212_s3 + $0xb8] sm:$0xff]  }
  0xec   :  { %4667 = vmatprep.subr.bf16.mxu1 %v5103_v42  ;;  %v5119_v34 = vld [vmem:[%s7214_s5] ss:$16 sps:$4 sm:$0xff]   ;;  %v5121_v35 = vld [vmem:[%s7214_s5 + $0x4] ss:$16 sps:$4 sm:$0xff]   ;;  %v5122_v36 = vld [vmem:[%s7214_s5 + $0x8] ss:$16 sps:$4 sm:$0xff]  }
  0xed   :  { %v5124_v37 = vld [vmem:[%s7214_s5 + $0xc] ss:$16 sps:$4 sm:$0xff]   ;;  %2175 = vmatprep.subr.bf16.mxu0 %v5121_v35  ;;  %v5125_v39 = vld [vmem:[%s7214_s5 + $0x20] ss:$16 sps:$4 sm:$0xff]   ;;  %v5128_v40 = vld [vmem:[%s7214_s5 + $0x28] ss:$16 sps:$4 sm:$0xff]  }
  0xee   :  { %v5130_v38 = vld [vmem:[%s7214_s5 + $0x2c] ss:$16 sps:$4 sm:$0xff]   ;;  %2176 = vmatpush1.bf16.msra.mxu0 %v5119_v34  ;;  %v5133_v41 = vld [vmem:[%s7214_s5 + $0x44] ss:$16 sps:$4 sm:$0xff]   ;;  %v5131_v43 = vld [vmem:[%s7214_s5 + $0x40] ss:$16 sps:$4 sm:$0xff]  }
  0xef   :  { %v5136_v42 = vld [vmem:[%s7214_s5 + $0x4c] ss:$16 sps:$4 sm:$0xff]   ;;  %v5134_v47 = vld [vmem:[%s7214_s5 + $0x48] ss:$16 sps:$4 sm:$0xff]   ;;  %v5181_v35 = vld [vmem:[%s7216_s7 + $0x74] ss:$28 sps:$4 sm:$0xff]  }
  0xf0   :  { %v5176_v34 = vld [vmem:[%s7216_s7 + $0x40] ss:$28 sps:$4 sm:$0xff]  }
 0x1a1   :  { %v1420_v54 = vpop.f32.mrb[0].mxu0  ;;  %v1592_v55 = vpop.f32.mrb[0].mxu1 }
 0x1a2   :  { %v4733_v56 = vadd.f32 %v1420_v54, %v256_v50  ;;  %v4737_v57 = vadd.f32 %v1592_v55, %v264_v51  ;;  %v1422_v58 = vpop.f32.mrb[1].mxu0  ;;  %v1594_v59 = vpop.f32.mrb[1].mxu1  ;;  %v5145_v54 = vld [vmem:[%s7214_s5 + $0x84] ss:$16 sps:$4 sm:$0xff]   ;;  %v5148_v55 = vld [vmem:[%s7214_s5 + $0x8c] ss:$16 sps:$4 sm:$0xff]  }
 0x1a3   :  { %v4734_v60 = vadd.f32 %v1422_v58, %v260_v52  ;;  %v4738_v61 = vadd.f32 %v1594_v59, %v268_v53  ;;  %v1424_v62 = vpop.f32.mrb[2].mxu0  ;;  %v1596_v63 = vpop.f32.mrb[2].mxu1  ;;  %v5151_v58 = vld [vmem:[%s7214_s5 + $0xa4] ss:$16 sps:$4 sm:$0xff]   ;;  %v5154_v59 = vld [vmem:[%s7214_s5 + $0xac] ss:$16 sps:$4 sm:$0xff]  }
 0x1a4   :  { %v4735_v0 = vadd.f32 %v1424_v62, %v256_v50  ;;  %v4739_v1 = vadd.f32 %v1596_v63, %v264_v51  ;;  %v1426_v2 = vpop.f32.mrb[3].mxu0  ;;  %v1598_v3 = vpop.f32.mrb[3].mxu1  ;;  %v1601_v6 = vmax.f32 %v4733_v56, 0.0  ;;  %v1603_v7 = vmax.f32 %v4737_v57, 0.0  ;;  %v5139_v50 = vld [vmem:[%s7214_s5 + $0x64] ss:$16 sps:$4 sm:$0xff]  }
 0x1a5   :  { %v4736_v4 = vadd.f32 %v1426_v2, %v260_v52  ;;  %v4740_v5 = vadd.f32 %v1598_v3, %v268_v53  ;;  %v1602_v10 = vmax.f32 %v4734_v60, 0.0  ;;  %v1604_v11 = vmax.f32 %v4738_v61, 0.0  ;;  %v5142_v51 = vld [vmem:[%s7214_s5 + $0x6c] ss:$16 sps:$4 sm:$0xff]   ;;  %v5137_v52 = vld [vmem:[%s7214_s5 + $0x60] ss:$16 sps:$4 sm:$0xff]  }
 0x1a6   :  { %v1605_v8 = vmax.f32 %v4735_v0, 0.0  ;;  %v1607_v9 = vmax.f32 %v4739_v1, 0.0  ;;  %v5140_v53 = vld [vmem:[%s7214_s5 + $0x68] ss:$16 sps:$4 sm:$0xff]   ;;  %v5143_v56 = vld [vmem:[%s7214_s5 + $0x80] ss:$16 sps:$4 sm:$0xff]  }
 0x1a7   :  { %v1606_v12 = vmax.f32 %v4736_v4, 0.0  ;;  %v1608_v13 = vmax.f32 %v4740_v5, 0.0  ;;  %v5146_v57 = vld [vmem:[%s7214_s5 + $0x88] ss:$16 sps:$4 sm:$0xff]   ;;  %v5149_v60 = vld [vmem:[%s7214_s5 + $0xa0] ss:$16 sps:$4 sm:$0xff]  }
 0x1a8   :  { %v1609_v14 = vpack.c.bf16 %v1605_v8, %v1601_v6  ;;  %v1611_v15 = vpack.c.bf16 %v1607_v9, %v1603_v7  ;;  %v5152_v61 = vld [vmem:[%s7214_s5 + $0xa8] ss:$16 sps:$4 sm:$0xff]   ;;  %v5157_v62 = vld [vmem:[%s7214_s5 + $0xc4] ss:$16 sps:$4 sm:$0xff]   ;;  %v5160_v63 = vld [vmem:[%s7214_s5 + $0xcc] ss:$16 sps:$4 sm:$0xff]  }
 0x1a9   :  { %v1610_v16 = vpack.c.bf16 %v1606_v12, %v1602_v10  ;;  %v1612_v17 = vpack.c.bf16 %v1608_v13, %v1604_v11  ;;  %v5155_v0 = vld [vmem:[%s7214_s5 + $0xc0] ss:$16 sps:$4 sm:$0xff]   ;;  %v5158_v1 = vld [vmem:[%s7214_s5 + $0xc8] ss:$16 sps:$4 sm:$0xff]   ;;  %v5163_v2 = vld [vmem:[%s7214_s5 + $0xe4] ss:$16 sps:$4 sm:$0xff]  }
 0x1aa   :  { %v5166_v3 = vld [vmem:[%s7214_s5 + $0xec] ss:$16 sps:$4 sm:$0xff]   ;;  %v5161_v4 = vld [vmem:[%s7214_s5 + $0xe0] ss:$16 sps:$4 sm:$0xff]   ;;  %v5164_v5 = vld [vmem:[%s7214_s5 + $0xe8] ss:$16 sps:$4 sm:$0xff]  }
 0x1ab   :  { %1908 = vmatprep.mubr.bf16.mxu1 %v1610_v16  ;;  %v5169_v6 = vld [vmem:[%s7216_s7 + $0x4] ss:$28 sps:$4 sm:$0xff]   ;;  %v5172_v7 = vld [vmem:[%s7216_s7 + $0xc] ss:$28 sps:$4 sm:$0xff]  }
 0x1ac   :  { %1909 = vmatmul.mubr.bf16.vlgmr.msra.gmra.mrb[4].mxu1 %v1609_v14  ;;  %v4356_v14 = vld [vmem:[%s7213_s4] ss:$0 sm:$0xff] }
 0x1ad   :  { %4668 = vmatpush3.bf16.msra.mxu1 %v5104_v18  ;;  %1949 = vmatprep.mubr.bf16.mxu1 %v1612_v17 }
 0x1ae   :  { %4669 = vmatprep.subr.bf16.mxu1 %v5105_v19 }
 0x1b1   :  { %4670 = vmatpush3.bf16.msra.mxu1 %v5106_v20 }
 0x1b2   :  { %4671 = vmatprep.subr.bf16.mxu1 %v5107_v21 }
 0x1b5   :  { %4672 = vmatpush3.bf16.msra.mxu1 %v5108_v22 }
 0x1b6   :  { %4673 = vmatprep.subr.bf16.mxu1 %v5109_v24 }
 0x1b9   :  { %4674 = vmatpush3.bf16.msra.mxu1 %v5110_v25 }
 0x1ba   :  { %4675 = vmatprep.subr.bf16.mxu1 %v5111_v26 }
 0x1bd   :  { %4676 = vmatpush3.bf16.msra.mxu1 %v5112_v27 }
 0x1be   :  { %4677 = vmatprep.subr.bf16.mxu1 %v5113_v28  ;;  %v5167_v28 = vld [vmem:[%s7216_s7] ss:$28 sps:$4 sm:$0xff]  }
 0x1c1   :  { %4678 = vmatpush3.bf16.msra.mxu1 %v5114_v29  ;;  %v5170_v29 = vld [vmem:[%s7216_s7 + $0x8] ss:$28 sps:$4 sm:$0xff]  }
 0x1c2   :  { %4679 = vmatprep.subr.bf16.mxu1 %v5115_v30 }
 0x1c5   :  { %4680 = vmatpush3.bf16.msra.mxu1 %v5116_v31  ;;  %v5175_v31 = vld [vmem:[%s7216_s7 + $0x3c] ss:$28 sps:$4 sm:$0xff]  }
 0x1c6   :  { %4681 = vmatprep.subr.bf16.mxu1 %v5117_v32  ;;  %v5178_v32 = vld [vmem:[%s7216_s7 + $0x44] ss:$28 sps:$4 sm:$0xff]  }
 0x1c9   :  { %4682 = vmatpush3.bf16.msra.mxu1 %v5118_v33  ;;  %v5173_v33 = vld [vmem:[%s7216_s7 + $0x38] ss:$28 sps:$4 sm:$0xff]  }
 0x1ca   :  { %2218 = vmatprep.subr.bf16.mxu1 %v5124_v37  ;;  %v5179_v37 = vld [vmem:[%s7216_s7 + $0x70] ss:$28 sps:$4 sm:$0xff]  }
 0x1cc   :  { %1950 = vmatmul.mubr.bf16.vlgmr.msra.gmra.mrb[8].mxu1 %v1611_v15 }
 0x1cd   :  { %2250 = vmatprep.mubr.bf16.mxu1 %v5567_v23  ;;  %v5127_v23 = vld [vmem:[%s7214_s5 + $0x24] ss:$16 sps:$4 sm:$0xff]   ;;  %2219 = vmatpush1.bf16.msra.mxu1 %v5122_v36  ;;  %v5184_v36 = vld [vmem:[%s7216_s7 + $0x7c] ss:$28 sps:$4 sm:$0xff]  }
 0x1ce   :  { %2177 = vmatprep.subr.bf16.mxu0 %v5127_v23  ;;  %2220 = vmatprep.subr.bf16.mxu1 %v5130_v38  ;;  %v5182_v23 = vld [vmem:[%s7216_s7 + $0x78] ss:$28 sps:$4 sm:$0xff]   ;;  %v5187_v38 = vld [vmem:[%s7216_s7 + $0xac] ss:$28 sps:$4 sm:$0xff]  }
 0x1cf   :  { %2178 = vmatpush1.bf16.msra.mxu0 %v5125_v39  ;;  %v5190_v39 = vld [vmem:[%s7216_s7 + $0xb4] ss:$28 sps:$4 sm:$0xff]  }
 0x1d0   :  { %2179 = vmatprep.subr.bf16.mxu0 %v5133_v41  ;;  %v5188_v41 = vld [vmem:[%s7216_s7 + $0xb0] ss:$28 sps:$4 sm:$0xff]  }
 0x1d1   :  { %2221 = vmatpush1.bf16.msra.mxu1 %v5128_v40  ;;  %v5185_v40 = vld [vmem:[%s7216_s7 + $0xa8] ss:$28 sps:$4 sm:$0xff]  }
 0x1d2   :  { %2222 = vmatprep.subr.bf16.mxu1 %v5136_v42  ;;  %v5193_v42 = vld [vmem:[%s7216_s7 + $0xe4] ss:$28 sps:$4 sm:$0xff]  }
 0x1d3   :  { %2180 = vmatpush1.bf16.msra.mxu0 %v5131_v43  ;;  %v5196_v43 = vld [vmem:[%s7216_s7 + $0xec] ss:$28 sps:$4 sm:$0xff]  }
 0x1d4   :  { %2181 = vmatprep.subr.bf16.mxu0 %v5139_v50  ;;  %v5194_v50 = vld [vmem:[%s7216_s7 + $0xe8] ss:$28 sps:$4 sm:$0xff]  }
 0x1d5   :  { %2223 = vmatpush1.bf16.msra.mxu1 %v5134_v47  ;;  %v5191_v47 = vld [vmem:[%s7216_s7 + $0xe0] ss:$28 sps:$4 sm:$0xff]  }
 0x1d6   :  { %2224 = vmatprep.subr.bf16.mxu1 %v5142_v51  ;;  %v5199_v51 = vld [vmem:[%s7216_s7 + $0x11c] ss:$28 sps:$4 sm:$0xff]  }
 0x1d7   :  { %2182 = vmatpush1.bf16.msra.mxu0 %v5137_v52  ;;  %v5202_v52 = vld [vmem:[%s7216_s7 + $0x124] ss:$28 sps:$4 sm:$0xff]  }
 0x1d8   :  { %2183 = vmatprep.subr.bf16.mxu0 %v5145_v54  ;;  %v5200_v54 = vld [vmem:[%s7216_s7 + $0x120] ss:$28 sps:$4 sm:$0xff]  }
 0x1d9   :  { %2225 = vmatpush1.bf16.msra.mxu1 %v5140_v53  ;;  %v5197_v53 = vld [vmem:[%s7216_s7 + $0x118] ss:$28 sps:$4 sm:$0xff]  }
 0x1da   :  { %2226 = vmatprep.subr.bf16.mxu1 %v5148_v55  ;;  %v5205_v55 = vld [vmem:[%s7216_s7 + $0x154] ss:$28 sps:$4 sm:$0xff]  }
 0x1db   :  { %2184 = vmatpush1.bf16.msra.mxu0 %v5143_v56  ;;  %v5208_v56 = vld [vmem:[%s7216_s7 + $0x15c] ss:$28 sps:$4 sm:$0xff]  }
 0x1dc   :  { %2185 = vmatprep.subr.bf16.mxu0 %v5151_v58  ;;  %v5206_v58 = vld [vmem:[%s7216_s7 + $0x158] ss:$28 sps:$4 sm:$0xff]  }
 0x1dd   :  { %2227 = vmatpush1.bf16.msra.mxu1 %v5146_v57  ;;  %v5203_v57 = vld [vmem:[%s7216_s7 + $0x150] ss:$28 sps:$4 sm:$0xff]  }
 0x1de   :  { %2228 = vmatprep.subr.bf16.mxu1 %v5154_v59  ;;  %v5211_v59 = vld [vmem:[%s7216_s7 + $0x18c] ss:$28 sps:$4 sm:$0xff]  }
 0x1df   :  { %2186 = vmatpush1.bf16.msra.mxu0 %v5149_v60  ;;  %v5214_v60 = vld [vmem:[%s7216_s7 + $0x194] ss:$28 sps:$4 sm:$0xff]  }
 0x1e0   :  { %2187 = vmatprep.subr.bf16.mxu0 %v5157_v62  ;;  %v5212_v62 = vld [vmem:[%s7216_s7 + $0x190] ss:$28 sps:$4 sm:$0xff]  }
 0x1e1   :  { %2229 = vmatpush1.bf16.msra.mxu1 %v5152_v61  ;;  %v5209_v61 = vld [vmem:[%s7216_s7 + $0x188] ss:$28 sps:$4 sm:$0xff]  }
 0x1e2   :  { %2230 = vmatprep.subr.bf16.mxu1 %v5160_v63  ;;  %v5217_v63 = vld [vmem:[%s7216_s7 + $0x1c4] ss:$28 sps:$4 sm:$0xff]  }
 0x1e3   :  { %2188 = vmatpush1.bf16.msra.mxu0 %v5155_v0  ;;  %v5220_v0 = vld [vmem:[%s7216_s7 + $0x1cc] ss:$28 sps:$4 sm:$0xff]  }
 0x1e4   :  { %2189 = vmatprep.subr.bf16.mxu0 %v5163_v2  ;;  %v5218_v2 = vld [vmem:[%s7216_s7 + $0x1c8] ss:$28 sps:$4 sm:$0xff]  }
 0x1e5   :  { %2231 = vmatpush1.bf16.msra.mxu1 %v5158_v1  ;;  %v5215_v1 = vld [vmem:[%s7216_s7 + $0x1c0] ss:$28 sps:$4 sm:$0xff]  }
 0x1e6   :  { %2232 = vmatprep.subr.bf16.mxu1 %v5166_v3  ;;  %v5223_v3 = vld [vmem:[%s7216_s7 + $0x1fc] ss:$28 sps:$4 sm:$0xff]  }
 0x1e7   :  { %2190 = vmatpush1.bf16.msra.mxu0 %v5161_v4  ;;  %v5226_v4 = vld [vmem:[%s7216_s7 + $0x204] ss:$28 sps:$4 sm:$0xff]  }
 0x1e8   :  { %3718 = vmatprep.subr.bf16.mxu0 %v5169_v6  ;;  %v5224_v6 = vld [vmem:[%s7216_s7 + $0x200] ss:$28 sps:$4 sm:$0xff]  }
 0x1e9   :  { %2233 = vmatpush1.bf16.msra.mxu1 %v5164_v5  ;;  %v5221_v5 = vld [vmem:[%s7216_s7 + $0x1f8] ss:$28 sps:$4 sm:$0xff]  }
 0x1ea   :  { %3804 = vmatprep.subr.bf16.mxu1 %v5172_v7  ;;  %v5229_v7 = vld [vmem:[%s7216_s7 + $0x234] ss:$28 sps:$4 sm:$0xff]  }
 0x27f   :  { %v4661_v8 = vpop.f32.mrb[4].mxu1 }
 0x280   :  { %v4662_v9 = vpop.f32.mrb[5].mxu1 }
 0x281   :  { %v4663_v10 = vadd.f32 %v4662_v9, %v4661_v8  ;;  %v4664_v11 = vpop.f32.mrb[6].mxu1  ;;  %v5232_v8 = vld [vmem:[%s7216_s7 + $0x23c] ss:$28 sps:$4 sm:$0xff]   ;;  %v5227_v9 = vld [vmem:[%s7216_s7 + $0x230] ss:$28 sps:$4 sm:$0xff]  }
 0x282   :  { %v4665_v12 = vpop.f32.mrb[7].mxu1 }
 0x283   :  { %v4666_v13 = vadd.f32 %v4665_v12, %v4664_v11  ;;  %v1911_v17 = vadd.f32 %v4663_v10, %v4356_v14  ;;  %v5230_v10 = vld [vmem:[%s7216_s7 + $0x238] ss:$28 sps:$4 sm:$0xff]   ;;  %v5235_v11 = vld [vmem:[%s7216_s7 + $0x26c] ss:$28 sps:$4 sm:$0xff]  }
 0x284   :  { %v5238_v12 = vld [vmem:[%s7216_s7 + $0x274] ss:$28 sps:$4 sm:$0xff]  }
 0x285   :  { %v1914_v21 = vadd.f32 %v4666_v13, %v4356_v14  ;;  %v5233_v13 = vld [vmem:[%s7216_s7 + $0x268] ss:$28 sps:$4 sm:$0xff]   ;;  %v5236_v14 = vld [vmem:[%s7216_s7 + $0x270] ss:$28 sps:$4 sm:$0xff]  }
 0x29f   :  { %v4683_v15 = vpop.f32.mrb[8].mxu1 }
 0x2a0   :  { %v4684_v16 = vpop.f32.mrb[9].mxu1 }
 0x2a1   :  { %v4685_v18 = vadd.f32 %v4684_v16, %v4683_v15  ;;  %v4686_v19 = vpop.f32.mrb[10].mxu1  ;;  %v5241_v15 = vld [vmem:[%s7216_s7 + $0x2a4] ss:$28 sps:$4 sm:$0xff]   ;;  %v5244_v16 = vld [vmem:[%s7216_s7 + $0x2ac] ss:$28 sps:$4 sm:$0xff]  }
 0x2a2   :  { %v4687_v20 = vpop.f32.mrb[11].mxu1 }
 0x2a3   :  { %v1952_v22 = vadd.f32 %v4685_v18, %v1911_v17  ;;  %v4688_v24 = vadd.f32 %v4687_v20, %v4686_v19  ;;  %v5239_v17 = vld [vmem:[%s7216_s7 + $0x2a0] ss:$28 sps:$4 sm:$0xff]   ;;  %v5242_v18 = vld [vmem:[%s7216_s7 + $0x2a8] ss:$28 sps:$4 sm:$0xff]  }
 0x2a4   :  { %v5247_v19 = vld [vmem:[%s7216_s7 + $0x2dc] ss:$28 sps:$4 sm:$0xff]   ;;  %v5250_v20 = vld [vmem:[%s7216_s7 + $0x2e4] ss:$28 sps:$4 sm:$0xff]  }
 0x2a5   :  { %v1955_v25 = vadd.f32 %v4688_v24, %v1914_v21  ;;  %v1958_v26 = vmax.f32 %v1952_v22, 0.0  ;;  %v5245_v21 = vld [vmem:[%s7216_s7 + $0x2d8] ss:$28 sps:$4 sm:$0xff]   ;;  %v5248_v22 = vld [vmem:[%s7216_s7 + $0x2e0] ss:$28 sps:$4 sm:$0xff]  }
 0x2a6   :  { %v5253_v24 = vld [vmem:[%s7216_s7 + $0x314] ss:$28 sps:$4 sm:$0xff]  }
 0x2a7   :  { %v1959_v27 = vmax.f32 %v1955_v25, 0.0  ;;  %v5256_v25 = vld [vmem:[%s7216_s7 + $0x31c] ss:$28 sps:$4 sm:$0xff]  }
 0x2a9   :  { %v1960_v30 = vpack.c.bf16 %v1959_v27, %v1958_v26  ;;  %v5251_v26 = vld [vmem:[%s7216_s7 + $0x310] ss:$28 sps:$4 sm:$0xff]   ;;  %v5254_v27 = vld [vmem:[%s7216_s7 + $0x318] ss:$28 sps:$4 sm:$0xff]  }
 0x2ab   :  { %2208 = vmatmul.mubr.bf16.vlgmr.msra.gmra.mrb[4].mxu0 %v1960_v30  ;;  %2251 = vmatmul.mubr.bf16.vlgmr.msra.gmra.mrb[12].mxu1 %v1960_v30  ;;  %v5257_v30 = vld [vmem:[%s7216_s7 + $0x348] ss:$28 sps:$4 sm:$0xff]  }
 0x2ac   :  { %3719 = vmatpush1.bf16.msra.mxu0 %v5167_v28  ;;  %3805 = vmatpush1.bf16.msra.mxu1 %v5170_v29  ;;  %v5259_v28 = vld [vmem:[%s7216_s7 + $0x34c] ss:$28 sps:$4 sm:$0xff]   ;;  %v5262_v29 = vld [vmem:[%s7216_s7 + $0x354] ss:$28 sps:$4 sm:$0xff]  }
 0x2ad   :  { %3720 = vmatprep.subr.bf16.mxu0 %v5175_v31  ;;  %3806 = vmatprep.subr.bf16.mxu1 %v5178_v32  ;;  %v5260_v31 = vld [vmem:[%s7216_s7 + $0x350] ss:$28 sps:$4 sm:$0xff]   ;;  %v5265_v32 = vld [vmem:[%s7216_s7 + $0x384] ss:$28 sps:$4 sm:$0xff]  }
 0x2b0   :  { %3721 = vmatpush1.bf16.msra.mxu0 %v5173_v33  ;;  %3807 = vmatpush1.bf16.msra.mxu1 %v5176_v34  ;;  %v5268_v33 = vld [vmem:[%s7216_s7 + $0x38c] ss:$28 sps:$4 sm:$0xff]   ;;  %v1993_v34 = vld [vmem:[%s7215_s6] sm:$0xf] }
 0x2b1   :  { %3722 = vmatprep.subr.bf16.mxu0 %v5181_v35  ;;  %3808 = vmatprep.subr.bf16.mxu1 %v5184_v36  ;;  %v1998_v35 = vrot.slane %v1993_v34, %v6310_v45  ;;  %v2006_v36 = vrot.slane %v1993_v34, %v6313_v46 }
 0x2b4   :  { %3723 = vmatpush1.bf16.msra.mxu0 %v5179_v37  ;;  %3809 = vmatpush1.bf16.msra.mxu1 %v5182_v23  ;;  %v2002_v37 = vrot.slane %v1993_v34, %v6319_v48  ;;  %v2010_v23 = vrot.slane %v1993_v34, %v6322_v49  ;;  %v5307_v34 = vld [vmem:[%s7216_s7 + $0x50c] ss:$28 sps:$4 sm:$0xff]  }
 0x2b5   :  { %3724 = vmatprep.subr.bf16.mxu0 %v5187_v38  ;;  %3810 = vmatprep.subr.bf16.mxu1 %v5190_v39 }
 0x2b8   :  { %3725 = vmatpush1.bf16.msra.mxu0 %v5185_v40  ;;  %3811 = vmatpush1.bf16.msra.mxu1 %v5188_v41 }
 0x2b9   :  { %3726 = vmatprep.subr.bf16.mxu0 %v5193_v42  ;;  %3812 = vmatprep.subr.bf16.mxu1 %v5196_v43 }
 0x2bc   :  { %3727 = vmatpush1.bf16.msra.mxu0 %v5191_v47  ;;  %3813 = vmatpush1.bf16.msra.mxu1 %v5194_v50 }
 0x2bd   :  { %3728 = vmatprep.subr.bf16.mxu0 %v5199_v51  ;;  %3814 = vmatprep.subr.bf16.mxu1 %v5202_v52 }
 0x2c0   :  { %3729 = vmatpush1.bf16.msra.mxu0 %v5197_v53  ;;  %3815 = vmatpush1.bf16.msra.mxu1 %v5200_v54 }
 0x2c1   :  { %3730 = vmatprep.subr.bf16.mxu0 %v5205_v55  ;;  %3816 = vmatprep.subr.bf16.mxu1 %v5208_v56 }
 0x2c4   :  { %3731 = vmatpush1.bf16.msra.mxu0 %v5203_v57  ;;  %3817 = vmatpush1.bf16.msra.mxu1 %v5206_v58 }
 0x2c5   :  { %3732 = vmatprep.subr.bf16.mxu0 %v5211_v59  ;;  %3818 = vmatprep.subr.bf16.mxu1 %v5214_v60 }
 0x2c8   :  { %3733 = vmatpush1.bf16.msra.mxu0 %v5209_v61  ;;  %3819 = vmatpush1.bf16.msra.mxu1 %v5212_v62 }
 0x2c9   :  { %3734 = vmatprep.subr.bf16.mxu0 %v5217_v63  ;;  %3820 = vmatprep.subr.bf16.mxu1 %v5220_v0 }
 0x2cc   :  { %3735 = vmatpush1.bf16.msra.mxu0 %v5215_v1  ;;  %3821 = vmatpush1.bf16.msra.mxu1 %v5218_v2 }
 0x2cd   :  { %3736 = vmatprep.subr.bf16.mxu0 %v5223_v3  ;;  %3822 = vmatprep.subr.bf16.mxu1 %v5226_v4 }
 0x2d0   :  { %3737 = vmatpush1.bf16.msra.mxu0 %v5221_v5  ;;  %3823 = vmatpush1.bf16.msra.mxu1 %v5224_v6 }
 0x2d1   :  { %3738 = vmatprep.subr.bf16.mxu0 %v5229_v7  ;;  %3824 = vmatprep.subr.bf16.mxu1 %v5232_v8  ;;  %v5263_v7 = vld [vmem:[%s7216_s7 + $0x380] ss:$28 sps:$4 sm:$0xff]   ;;  %v5266_v8 = vld [vmem:[%s7216_s7 + $0x388] ss:$28 sps:$4 sm:$0xff]  }
 0x2d4   :  { %3739 = vmatpush1.bf16.msra.mxu0 %v5227_v9  ;;  %3825 = vmatpush1.bf16.msra.mxu1 %v5230_v10  ;;  %v5271_v9 = vld [vmem:[%s7216_s7 + $0x3bc] ss:$28 sps:$4 sm:$0xff]   ;;  %v5274_v10 = vld [vmem:[%s7216_s7 + $0x3c4] ss:$28 sps:$4 sm:$0xff]  }
 0x2d5   :  { %3740 = vmatprep.subr.bf16.mxu0 %v5235_v11  ;;  %3826 = vmatprep.subr.bf16.mxu1 %v5238_v12  ;;  %v5269_v11 = vld [vmem:[%s7216_s7 + $0x3b8] ss:$28 sps:$4 sm:$0xff]   ;;  %v5272_v12 = vld [vmem:[%s7216_s7 + $0x3c0] ss:$28 sps:$4 sm:$0xff]  }
 0x2d8   :  { %3741 = vmatpush1.bf16.msra.mxu0 %v5233_v13  ;;  %3827 = vmatpush1.bf16.msra.mxu1 %v5236_v14  ;;  %v5277_v13 = vld [vmem:[%s7216_s7 + $0x3f4] ss:$28 sps:$4 sm:$0xff]   ;;  %v5280_v14 = vld [vmem:[%s7216_s7 + $0x3fc] ss:$28 sps:$4 sm:$0xff]  }
 0x2d9   :  { %3742 = vmatprep.subr.bf16.mxu0 %v5241_v15  ;;  %3828 = vmatprep.subr.bf16.mxu1 %v5244_v16  ;;  %v5275_v15 = vld [vmem:[%s7216_s7 + $0x3f0] ss:$28 sps:$4 sm:$0xff]   ;;  %v5278_v16 = vld [vmem:[%s7216_s7 + $0x3f8] ss:$28 sps:$4 sm:$0xff]  }
 0x2dc   :  { %3743 = vmatpush1.bf16.msra.mxu0 %v5239_v17  ;;  %3829 = vmatpush1.bf16.msra.mxu1 %v5242_v18  ;;  %v5283_v17 = vld [vmem:[%s7216_s7 + $0x42c] ss:$28 sps:$4 sm:$0xff]   ;;  %v5286_v18 = vld [vmem:[%s7216_s7 + $0x434] ss:$28 sps:$4 sm:$0xff]  }
 0x2dd   :  { %3744 = vmatprep.subr.bf16.mxu0 %v5247_v19  ;;  %3830 = vmatprep.subr.bf16.mxu1 %v5250_v20  ;;  %v5281_v19 = vld [vmem:[%s7216_s7 + $0x428] ss:$28 sps:$4 sm:$0xff]   ;;  %v5284_v20 = vld [vmem:[%s7216_s7 + $0x430] ss:$28 sps:$4 sm:$0xff]  }
 0x2e0   :  { %3745 = vmatpush1.bf16.msra.mxu0 %v5245_v21  ;;  %3831 = vmatpush1.bf16.msra.mxu1 %v5248_v22  ;;  %v5289_v21 = vld [vmem:[%s7216_s7 + $0x464] ss:$28 sps:$4 sm:$0xff]   ;;  %v5292_v22 = vld [vmem:[%s7216_s7 + $0x46c] ss:$28 sps:$4 sm:$0xff]  }
 0x2e1   :  { %3746 = vmatprep.subr.bf16.mxu0 %v5253_v24  ;;  %3832 = vmatprep.subr.bf16.mxu1 %v5256_v25  ;;  %v5287_v24 = vld [vmem:[%s7216_s7 + $0x460] ss:$28 sps:$4 sm:$0xff]   ;;  %v5290_v25 = vld [vmem:[%s7216_s7 + $0x468] ss:$28 sps:$4 sm:$0xff]  }
 0x2e4   :  { %3747 = vmatpush1.bf16.msra.mxu0 %v5251_v26  ;;  %3833 = vmatpush1.bf16.msra.mxu1 %v5254_v27  ;;  %v5295_v26 = vld [vmem:[%s7216_s7 + $0x49c] ss:$28 sps:$4 sm:$0xff]   ;;  %v5298_v27 = vld [vmem:[%s7216_s7 + $0x4a4] ss:$28 sps:$4 sm:$0xff]  }
 0x2e5   :  { %3748 = vmatprep.subr.bf16.mxu0 %v5259_v28  ;;  %3834 = vmatprep.subr.bf16.mxu1 %v5262_v29  ;;  %v5293_v28 = vld [vmem:[%s7216_s7 + $0x498] ss:$28 sps:$4 sm:$0xff]   ;;  %v5296_v29 = vld [vmem:[%s7216_s7 + $0x4a0] ss:$28 sps:$4 sm:$0xff]  }
 0x2e8   :  { %3749 = vmatpush1.bf16.msra.mxu0 %v5257_v30  ;;  %3835 = vmatpush1.bf16.msra.mxu1 %v5260_v31  ;;  %v5301_v30 = vld [vmem:[%s7216_s7 + $0x4d4] ss:$28 sps:$4 sm:$0xff]   ;;  %v5304_v31 = vld [vmem:[%s7216_s7 + $0x4dc] ss:$28 sps:$4 sm:$0xff]  }
 0x2e9   :  { %3761 = vmatprep.subr.bf16.mxu0 %v5265_v32  ;;  %3847 = vmatprep.subr.bf16.mxu1 %v5268_v33  ;;  %v5299_v32 = vld [vmem:[%s7216_s7 + $0x4d0] ss:$28 sps:$4 sm:$0xff]   ;;  %v5302_v33 = vld [vmem:[%s7216_s7 + $0x4d8] ss:$28 sps:$4 sm:$0xff]  }
 0x37e   :  { %v2209_v38 = vpop.f32.mrb[4].mxu0  ;;  %v2252_v39 = vpop.f32.mrb[12].mxu1 }
 0x37f   :  { %v2210_v40 = vadd.f32 %v2209_v38, %v1998_v35  ;;  %v2253_v41 = vadd.f32 %v2252_v39, %v2006_v36  ;;  %v2211_v42 = vpop.f32.mrb[5].mxu0  ;;  %v2254_v43 = vpop.f32.mrb[13].mxu1  ;;  %v5316_v38 = vld [vmem:[%s7216_s7 + $0x54c] ss:$28 sps:$4 sm:$0xff]   ;;  %v5311_v39 = vld [vmem:[%s7216_s7 + $0x540] ss:$28 sps:$4 sm:$0xff]  }
 0x380   :  { %v2212_v47 = vadd.f32 %v2211_v42, %v2002_v37  ;;  %v2255_v50 = vadd.f32 %v2254_v43, %v2010_v23  ;;  %v2213_v51 = vpop.f32.mrb[6].mxu0  ;;  %v2256_v52 = vpop.f32.mrb[14].mxu1  ;;  %v5322_v42 = vld [vmem:[%s7216_s7 + $0x584] ss:$28 sps:$4 sm:$0xff]   ;;  %v5317_v43 = vld [vmem:[%s7216_s7 + $0x578] ss:$28 sps:$4 sm:$0xff]  }
 0x381   :  { %v2214_v53 = vadd.f32 %v2213_v51, %v1998_v35  ;;  %v2257_v54 = vadd.f32 %v2256_v52, %v2006_v36  ;;  %v2215_v55 = vpop.f32.mrb[7].mxu0  ;;  %v2258_v56 = vpop.f32.mrb[15].mxu1  ;;  %v2261_v59 = vmax.f32 %v2210_v40, 0.0  ;;  %v2263_v60 = vmax.f32 %v2253_v41, 0.0  ;;  %v5310_v35 = vld [vmem:[%s7216_s7 + $0x514] ss:$28 sps:$4 sm:$0xff]  }
 0x382   :  { %v2216_v57 = vadd.f32 %v2215_v55, %v2002_v37  ;;  %v2259_v58 = vadd.f32 %v2258_v56, %v2010_v23  ;;  %v2262_v63 = vmax.f32 %v2212_v47, 0.0  ;;  %v2264_v0 = vmax.f32 %v2255_v50, 0.0  ;;  %v5305_v36 = vld [vmem:[%s7216_s7 + $0x508] ss:$28 sps:$4 sm:$0xff]   ;;  %v5308_v37 = vld [vmem:[%s7216_s7 + $0x510] ss:$28 sps:$4 sm:$0xff]  }
 0x383   :  { %v2265_v61 = vmax.f32 %v2214_v53, 0.0  ;;  %v2267_v62 = vmax.f32 %v2257_v54, 0.0  ;;  %v5313_v23 = vld [vmem:[%s7216_s7 + $0x544] ss:$28 sps:$4 sm:$0xff]   ;;  %v5319_v41 = vld [vmem:[%s7216_s7 + $0x57c] ss:$28 sps:$4 sm:$0xff]  }
 0x384   :  { %v2266_v1 = vmax.f32 %v2216_v57, 0.0  ;;  %v2268_v2 = vmax.f32 %v2259_v58, 0.0  ;;  %v5314_v40 = vld [vmem:[%s7216_s7 + $0x548] ss:$28 sps:$4 sm:$0xff]   ;;  %v5320_v47 = vld [vmem:[%s7216_s7 + $0x580] ss:$28 sps:$4 sm:$0xff]  }
 0x385   :  { %v6678_v3 = vpack.c.bf16 %v2265_v61, %v2261_v59  ;;  %v6680_v4 = vpack.c.bf16 %v2267_v62, %v2263_v60  ;;  %v5325_v50 = vld [vmem:[%s7216_s7 + $0x5b4] ss:$28 sps:$4 sm:$0xff]   ;;  %v5328_v51 = vld [vmem:[%s7216_s7 + $0x5bc] ss:$28 sps:$4 sm:$0xff]   ;;  %v5331_v54 = vld [vmem:[%s7216_s7 + $0x5ec] ss:$28 sps:$4 sm:$0xff]  }
 0x386   :  { %v6682_v5 = vpack.c.bf16 %v2266_v1, %v2262_v63  ;;  %v6684_v6 = vpack.c.bf16 %v2268_v2, %v2264_v0  ;;  %v5323_v52 = vld [vmem:[%s7216_s7 + $0x5b0] ss:$28 sps:$4 sm:$0xff]   ;;  %v5326_v53 = vld [vmem:[%s7216_s7 + $0x5b8] ss:$28 sps:$4 sm:$0xff]   ;;  %v5329_v56 = vld [vmem:[%s7216_s7 + $0x5e8] ss:$28 sps:$4 sm:$0xff]  }
 0x387   :  { %v5334_v55 = vld [vmem:[%s7216_s7 + $0x5f4] ss:$28 sps:$4 sm:$0xff]   ;;  %v5337_v58 = vld [vmem:[%s7216_s7 + $0x624] ss:$28 sps:$4 sm:$0xff]   ;;  %v5340_v59 = vld [vmem:[%s7216_s7 + $0x62c] ss:$28 sps:$4 sm:$0xff]  }
 0x388   :  { %3750 = vmatprep.mubr.bf16.mxu0 %v6682_v5  ;;  %3836 = vmatprep.mubr.bf16.mxu1 %v6682_v5  ;;  %v5332_v57 = vld [vmem:[%s7216_s7 + $0x5f0] ss:$28 sps:$4 sm:$0xff]   ;;  %v5335_v60 = vld [vmem:[%s7216_s7 + $0x620] ss:$28 sps:$4 sm:$0xff]   ;;  %v5338_v61 = vld [vmem:[%s7216_s7 + $0x628] ss:$28 sps:$4 sm:$0xff]  }
 0x389   :  { %3751 = vmatmul.mubr.bf16.vlgmr.msra.gmra.mrb[8].mxu0 %v6678_v3  ;;  %3837 = vmatmul.mubr.bf16.vlgmr.msra.gmra.mrb[16].mxu1 %v6678_v3  ;;  %v5343_v62 = vld [vmem:[%s7216_s7 + $0x65c] ss:$28 sps:$4 sm:$0xff]   ;;  %v5346_v63 = vld [vmem:[%s7216_s7 + $0x664] ss:$28 sps:$4 sm:$0xff]   ;;  %v5349_v2 = vld [vmem:[%s7216_s7 + $0x694] ss:$28 sps:$4 sm:$0xff]  }
 0x38a   :  { %3762 = vmatpush1.bf16.msra.mxu0 %v5263_v7  ;;  %3848 = vmatpush1.bf16.msra.mxu1 %v5266_v8  ;;  %v5341_v0 = vld [vmem:[%s7216_s7 + $0x658] ss:$28 sps:$4 sm:$0xff]   ;;  %v5344_v1 = vld [vmem:[%s7216_s7 + $0x660] ss:$28 sps:$4 sm:$0xff]   ;;  %v5347_v8 = vld [vmem:[%s7216_s7 + $0x690] ss:$28 sps:$4 sm:$0xff]  }
 0x38b   :  { %3793 = vmatprep.mubr.bf16.mxu0 %v6684_v6  ;;  %3879 = vmatprep.mubr.bf16.mxu1 %v6684_v6  ;;  %v5352_v7 = vld [vmem:[%s7216_s7 + $0x69c] ss:$28 sps:$4 sm:$0xff]  }
 0x38c   :  { %3763 = vmatprep.subr.bf16.mxu0 %v5271_v9  ;;  %3849 = vmatprep.subr.bf16.mxu1 %v5274_v10  ;;  %v5350_v9 = vld [vmem:[%s7216_s7 + $0x698] ss:$28 sps:$4 sm:$0xff]   ;;  %v5355_v10 = vld [vmem:[%s7216_s7 + $0x6cc] ss:$28 sps:$4 sm:$0xff]  }
 0x38e   :  { %3764 = vmatpush1.bf16.msra.mxu0 %v5269_v11  ;;  %3850 = vmatpush1.bf16.msra.mxu1 %v5272_v12  ;;  %v5358_v11 = vld [vmem:[%s7216_s7 + $0x6d4] ss:$28 sps:$4 sm:$0xff]   ;;  %v5353_v12 = vld [vmem:[%s7216_s7 + $0x6c8] ss:$28 sps:$4 sm:$0xff]  }
 0x38f   :  { %3765 = vmatprep.subr.bf16.mxu0 %v5277_v13  ;;  %3851 = vmatprep.subr.bf16.mxu1 %v5280_v14  ;;  %v5356_v13 = vld [vmem:[%s7216_s7 + $0x6d0] ss:$28 sps:$4 sm:$0xff]  }
 0x390   :  { %v5361_v14 = vld [vmem:[%s7216_s7 + $0x14] ss:$28 sps:$4 sm:$0xff]  }
 0x392   :  { %3766 = vmatpush1.bf16.msra.mxu0 %v5275_v15  ;;  %3852 = vmatpush1.bf16.msra.mxu1 %v5278_v16  ;;  %v5362_v15 = vld [vmem:[%s7216_s7 + $0x1d8] ss:$28 sps:$4 sm:$0xff]   ;;  %v5359_v16 = vld [vmem:[%s7216_s7 + $0x10] ss:$28 sps:$4 sm:$0xff]  }
 0x393   :  { %3767 = vmatprep.subr.bf16.mxu0 %v5283_v17  ;;  %3853 = vmatprep.subr.bf16.mxu1 %v5286_v18  ;;  %v5363_v17 = vld [vmem:[%s7216_s7 + $0x18] ss:$28 sps:$4 sm:$0xff]   ;;  %v5366_v18 = vld [vmem:[%s7216_s7 + $0x4c] ss:$28 sps:$4 sm:$0xff]  }
 0x396   :  { %3768 = vmatpush1.bf16.msra.mxu0 %v5281_v19  ;;  %3854 = vmatpush1.bf16.msra.mxu1 %v5284_v20  ;;  %v5367_v19 = vld [vmem:[%s7216_s7 + $0x210] ss:$28 sps:$4 sm:$0xff]   ;;  %v5364_v20 = vld [vmem:[%s7216_s7 + $0x48] ss:$28 sps:$4 sm:$0xff]  }
 0x397   :  { %3769 = vmatprep.subr.bf16.mxu0 %v5289_v21  ;;  %3855 = vmatprep.subr.bf16.mxu1 %v5292_v22  ;;  %v5368_v21 = vld [vmem:[%s7216_s7 + $0x50] ss:$28 sps:$4 sm:$0xff]   ;;  %v5371_v22 = vld [vmem:[%s7216_s7 + $0x84] ss:$28 sps:$4 sm:$0xff]  }
 0x39a   :  { %3770 = vmatpush1.bf16.msra.mxu0 %v5287_v24  ;;  %3856 = vmatpush1.bf16.msra.mxu1 %v5290_v25  ;;  %v5372_v24 = vld [vmem:[%s7216_s7 + $0x248] ss:$28 sps:$4 sm:$0xff]   ;;  %v5369_v25 = vld [vmem:[%s7216_s7 + $0x80] ss:$28 sps:$4 sm:$0xff]  }
 0x39b   :  { %3771 = vmatprep.subr.bf16.mxu0 %v5295_v26  ;;  %3857 = vmatprep.subr.bf16.mxu1 %v5298_v27  ;;  %v5376_v26 = vld [vmem:[%s7216_s7 + $0xbc] ss:$28 sps:$4 sm:$0xff]  }
 0x39c   :  { %v5377_v27 = vld [vmem:[%s7216_s7 + $0x280] ss:$28 sps:$4 sm:$0xff]  }
 0x39e   :  { %3772 = vmatpush1.bf16.msra.mxu0 %v5293_v28  ;;  %3858 = vmatpush1.bf16.msra.mxu1 %v5296_v29  ;;  %v5374_v28 = vld [vmem:[%s7216_s7 + $0xb8] ss:$28 sps:$4 sm:$0xff]   ;;  %v5378_v29 = vld [vmem:[%s7216_s7 + $0xc0] ss:$28 sps:$4 sm:$0xff]  }
 0x39f   :  { %3773 = vmatprep.subr.bf16.mxu0 %v5301_v30  ;;  %3859 = vmatprep.subr.bf16.mxu1 %v5304_v31  ;;  %v5381_v30 = vld [vmem:[%s7216_s7 + $0xf4] ss:$28 sps:$4 sm:$0xff]  }
 0x3a0   :  { %v5382_v31 = vld [vmem:[%s7216_s7 + $0x2b8] ss:$28 sps:$4 sm:$0xff]  }
 0x3a2   :  { %3774 = vmatpush1.bf16.msra.mxu0 %v5299_v32  ;;  %3860 = vmatpush1.bf16.msra.mxu1 %v5302_v33  ;;  %v5379_v32 = vld [vmem:[%s7216_s7 + $0xf0] ss:$28 sps:$4 sm:$0xff]   ;;  %v5383_v33 = vld [vmem:[%s7216_s7 + $0xf8] ss:$28 sps:$4 sm:$0xff]  }
 0x3a3   :  { %3775 = vmatprep.subr.bf16.mxu0 %v5307_v34  ;;  %3861 = vmatprep.subr.bf16.mxu1 %v5310_v35  ;;  %v5386_v34 = vld [vmem:[%s7216_s7 + $0x12c] ss:$28 sps:$4 sm:$0xff]  }
 0x3a4   :  { %v5387_v35 = vld [vmem:[%s7216_s7 + $0x2f0] ss:$28 sps:$4 sm:$0xff]  }
 0x3a6   :  { %3776 = vmatpush1.bf16.msra.mxu0 %v5305_v36  ;;  %3862 = vmatpush1.bf16.msra.mxu1 %v5308_v37  ;;  %v5384_v36 = vld [vmem:[%s7216_s7 + $0x128] ss:$28 sps:$4 sm:$0xff]   ;;  %v5388_v37 = vld [vmem:[%s7216_s7 + $0x130] ss:$28 sps:$4 sm:$0xff]  }
 0x3a7   :  { %3777 = vmatprep.subr.bf16.mxu0 %v5313_v23  ;;  %3863 = vmatprep.subr.bf16.mxu1 %v5316_v38  ;;  %v5391_v23 = vld [vmem:[%s7216_s7 + $0x164] ss:$28 sps:$4 sm:$0xff]  }
 0x3a8   :  { %v5392_v38 = vld [vmem:[%s7216_s7 + $0x328] ss:$28 sps:$4 sm:$0xff]  }
 0x3aa   :  { %3778 = vmatpush1.bf16.msra.mxu0 %v5311_v39  ;;  %3864 = vmatpush1.bf16.msra.mxu1 %v5314_v40  ;;  %v5389_v39 = vld [vmem:[%s7216_s7 + $0x160] ss:$28 sps:$4 sm:$0xff]   ;;  %v5393_v40 = vld [vmem:[%s7216_s7 + $0x168] ss:$28 sps:$4 sm:$0xff]  }
 0x3ab   :  { %3779 = vmatprep.subr.bf16.mxu0 %v5319_v41  ;;  %3865 = vmatprep.subr.bf16.mxu1 %v5322_v42  ;;  %v5396_v41 = vld [vmem:[%s7216_s7 + $0x19c] ss:$28 sps:$4 sm:$0xff]  }
 0x3ac   :  { %v5397_v42 = vld [vmem:[%s7216_s7 + $0x360] ss:$28 sps:$4 sm:$0xff]  }
 0x3ae   :  { %3780 = vmatpush1.bf16.msra.mxu0 %v5317_v43  ;;  %3866 = vmatpush1.bf16.msra.mxu1 %v5320_v47  ;;  %v5394_v43 = vld [vmem:[%s7216_s7 + $0x198] ss:$28 sps:$4 sm:$0xff]   ;;  %v5398_v47 = vld [vmem:[%s7216_s7 + $0x1a0] ss:$28 sps:$4 sm:$0xff]  }
 0x3af   :  { %3781 = vmatprep.subr.bf16.mxu0 %v5325_v50  ;;  %3867 = vmatprep.subr.bf16.mxu1 %v5328_v51  ;;  %v5401_v50 = vld [vmem:[%s7216_s7 + $0x1d4] ss:$28 sps:$4 sm:$0xff]  }
 0x3b0   :  { %v5402_v51 = vld [vmem:[%s7216_s7 + $0x558] ss:$28 sps:$4 sm:$0xff]  }
 0x3b2   :  { %3782 = vmatpush1.bf16.msra.mxu0 %v5323_v52  ;;  %3868 = vmatpush1.bf16.msra.mxu1 %v5326_v53  ;;  %v5399_v52 = vld [vmem:[%s7216_s7 + $0x1d0] ss:$28 sps:$4 sm:$0xff]   ;;  %v5403_v53 = vld [vmem:[%s7216_s7 + $0x398] ss:$28 sps:$4 sm:$0xff]  }
 0x3b3   :  { %3783 = vmatprep.subr.bf16.mxu0 %v5331_v54  ;;  %3869 = vmatprep.subr.bf16.mxu1 %v5334_v55  ;;  %v5406_v54 = vld [vmem:[%s7216_s7 + $0x20c] ss:$28 sps:$4 sm:$0xff]  }
 0x3b4   :  { %v5407_v55 = vld [vmem:[%s7216_s7 + $0x590] ss:$28 sps:$4 sm:$0xff]  }
 0x3b6   :  { %3784 = vmatpush1.bf16.msra.mxu0 %v5329_v56  ;;  %3870 = vmatpush1.bf16.msra.mxu1 %v5332_v57  ;;  %v5404_v56 = vld [vmem:[%s7216_s7 + $0x208] ss:$28 sps:$4 sm:$0xff]   ;;  %v5408_v57 = vld [vmem:[%s7216_s7 + $0x3d0] ss:$28 sps:$4 sm:$0xff]  }
 0x3b7   :  { %3785 = vmatprep.subr.bf16.mxu0 %v5337_v58  ;;  %3871 = vmatprep.subr.bf16.mxu1 %v5340_v59  ;;  %v5411_v58 = vld [vmem:[%s7216_s7 + $0x244] ss:$28 sps:$4 sm:$0xff]  }
 0x3b8   :  { %v5412_v59 = vld [vmem:[%s7216_s7 + $0x5c8] ss:$28 sps:$4 sm:$0xff]  }
 0x3ba   :  { %3786 = vmatpush1.bf16.msra.mxu0 %v5335_v60  ;;  %3872 = vmatpush1.bf16.msra.mxu1 %v5338_v61  ;;  %v5409_v60 = vld [vmem:[%s7216_s7 + $0x240] ss:$28 sps:$4 sm:$0xff]   ;;  %v5413_v61 = vld [vmem:[%s7216_s7 + $0x408] ss:$28 sps:$4 sm:$0xff]  }
 0x3bb   :  { %3787 = vmatprep.subr.bf16.mxu0 %v5343_v62  ;;  %3873 = vmatprep.subr.bf16.mxu1 %v5346_v63  ;;  %v5416_v62 = vld [vmem:[%s7216_s7 + $0x27c] ss:$28 sps:$4 sm:$0xff]  }
 0x3bc   :  { %v5417_v63 = vld [vmem:[%s7216_s7 + $0x600] ss:$28 sps:$4 sm:$0xff]  }
 0x3be   :  { %3788 = vmatpush1.bf16.msra.mxu0 %v5341_v0  ;;  %3874 = vmatpush1.bf16.msra.mxu1 %v5344_v1  ;;  %v5414_v0 = vld [vmem:[%s7216_s7 + $0x278] ss:$28 sps:$4 sm:$0xff]   ;;  %v5418_v1 = vld [vmem:[%s7216_s7 + $0x440] ss:$28 sps:$4 sm:$0xff]  }
 0x3bf   :  { %3789 = vmatprep.subr.bf16.mxu0 %v5349_v2  ;;  %3875 = vmatprep.subr.bf16.mxu1 %v5352_v7  ;;  %v5421_v2 = vld [vmem:[%s7216_s7 + $0x2b4] ss:$28 sps:$4 sm:$0xff]  }
 0x3c0   :  { %v5422_v7 = vld [vmem:[%s7216_s7 + $0x638] ss:$28 sps:$4 sm:$0xff]  }
 0x3c2   :  { %3790 = vmatpush1.bf16.msra.mxu0 %v5347_v8  ;;  %3876 = vmatpush1.bf16.msra.mxu1 %v5350_v9  ;;  %v5419_v8 = vld [vmem:[%s7216_s7 + $0x2b0] ss:$28 sps:$4 sm:$0xff]   ;;  %v5423_v9 = vld [vmem:[%s7216_s7 + $0x478] ss:$28 sps:$4 sm:$0xff]  }
 0x3c3   :  { %3791 = vmatprep.subr.bf16.mxu0 %v5355_v10  ;;  %3877 = vmatprep.subr.bf16.mxu1 %v5358_v11  ;;  %v5426_v10 = vld [vmem:[%s7216_s7 + $0x2ec] ss:$28 sps:$4 sm:$0xff]  }
 0x3c4   :  { %v5427_v11 = vld [vmem:[%s7216_s7 + $0x670] ss:$28 sps:$4 sm:$0xff]  }
 0x3c6   :  { %3792 = vmatpush1.bf16.msra.mxu0 %v5353_v12  ;;  %3878 = vmatpush1.bf16.msra.mxu1 %v5356_v13  ;;  %v5424_v12 = vld [vmem:[%s7216_s7 + $0x2e8] ss:$28 sps:$4 sm:$0xff]   ;;  %v5428_v13 = vld [vmem:[%s7216_s7 + $0x4b0] ss:$28 sps:$4 sm:$0xff]  }
 0x3c7   :  { %3890 = vmatprep.subr.bf16.mxu0 %v5361_v14  ;;  %4689 = vmatprep.subr.bf16.mxu1 %v5362_v15  ;;  %v5431_v14 = vld [vmem:[%s7216_s7 + $0x324] ss:$28 sps:$4 sm:$0xff]  }
 0x3c8   :  { %v5432_v15 = vld [vmem:[%s7216_s7 + $0x6a8] ss:$28 sps:$4 sm:$0xff]  }
 0x3c9   :  { %3794 = vmatmul.mubr.bf16.vlgmr.msra.gmra.mrb[8].mxu0 %v6680_v4  ;;  %3880 = vmatmul.mubr.bf16.vlgmr.msra.gmra.mrb[16].mxu1 %v6680_v4 }
 0x3ca   :  { %3891 = vmatpush1.bf16.msra.mxu0 %v5359_v16  ;;  %3922 = vmatprep.mubr.bf16.mxu0 %v6682_v5  ;;  %v5429_v16 = vld [vmem:[%s7216_s7 + $0x320] ss:$28 sps:$4 sm:$0xff]  }
 0x3cb   :  { %4690 = vmatpush3.bf16.msra.mxu1 %v5363_v17  ;;  %4008 = vmatprep.mubr.bf16.mxu1 %v6682_v5  ;;  %v5373_v5 = vld [vmem:[%s7216_s7 + $0x88] ss:$28 sps:$4 sm:$0xff]  }
 0x3cc   :  { %3892 = vmatprep.subr.bf16.mxu0 %v5366_v18  ;;  %4691 = vmatprep.subr.bf16.mxu1 %v5367_v19  ;;  %v5433_v17 = vld [vmem:[%s7216_s7 + $0x4e8] ss:$28 sps:$4 sm:$0xff]   ;;  %v5436_v18 = vld [vmem:[%s7216_s7 + $0x35c] ss:$28 sps:$4 sm:$0xff]  }
 0x3cd   :  { %v5437_v19 = vld [vmem:[%s7216_s7 + $0x6e0] ss:$28 sps:$4 sm:$0xff]  }
 0x3ce   :  { %3893 = vmatpush1.bf16.msra.mxu0 %v5364_v20  ;;  %v5434_v20 = vld [vmem:[%s7216_s7 + $0x358] ss:$28 sps:$4 sm:$0xff]  }
 0x3cf   :  { %4692 = vmatpush3.bf16.msra.mxu1 %v5368_v21  ;;  %3894 = vmatprep.subr.bf16.mxu0 %v5371_v22  ;;  %v5438_v21 = vld [vmem:[%s7216_s7 + $0x520] ss:$28 sps:$4 sm:$0xff]   ;;  %v5441_v22 = vld [vmem:[%s7216_s7 + $0x394] ss:$28 sps:$4 sm:$0xff]  }
 0x3d0   :  { %4693 = vmatprep.subr.bf16.mxu1 %v5372_v24  ;;  %v5439_v24 = vld [vmem:[%s7216_s7 + $0x390] ss:$28 sps:$4 sm:$0xff]  }
 0x3d2   :  { %3895 = vmatpush1.bf16.msra.mxu0 %v5369_v25  ;;  %v5444_v25 = vld [vmem:[%s7216_s7 + $0x3cc] ss:$28 sps:$4 sm:$0xff]  }
 0x3d3   :  { %4694 = vmatpush3.bf16.msra.mxu1 %v5373_v5  ;;  %3896 = vmatprep.subr.bf16.mxu0 %v5376_v26  ;;  %v5442_v5 = vld [vmem:[%s7216_s7 + $0x3c8] ss:$28 sps:$4 sm:$0xff]  }
 0x3d4   :  { %4695 = vmatprep.subr.bf16.mxu1 %v5377_v27  ;;  %v5447_v26 = vld [vmem:[%s7216_s7 + $0x404] ss:$28 sps:$4 sm:$0xff]  }
 0x3d5   :  { %v5445_v27 = vld [vmem:[%s7216_s7 + $0x400] ss:$28 sps:$4 sm:$0xff]  }
 0x3d6   :  { %3897 = vmatpush1.bf16.msra.mxu0 %v5374_v28  ;;  %v5453_v28 = vld [vmem:[%s7216_s7 + $0x474] ss:$28 sps:$4 sm:$0xff]  }
 0x3d7   :  { %4696 = vmatpush3.bf16.msra.mxu1 %v5378_v29  ;;  %3898 = vmatprep.subr.bf16.mxu0 %v5381_v30  ;;  %v5451_v29 = vld [vmem:[%s7216_s7 + $0x470] ss:$28 sps:$4 sm:$0xff]  }
 0x3d8   :  { %4697 = vmatprep.subr.bf16.mxu1 %v5382_v31  ;;  %v5456_v30 = vld [vmem:[%s7216_s7 + $0x4ac] ss:$28 sps:$4 sm:$0xff]  }
 0x3d9   :  { %v5454_v31 = vld [vmem:[%s7216_s7 + $0x4a8] ss:$28 sps:$4 sm:$0xff]  }
 0x3da   :  { %3899 = vmatpush1.bf16.msra.mxu0 %v5379_v32  ;;  %v5459_v32 = vld [vmem:[%s7216_s7 + $0x4e4] ss:$28 sps:$4 sm:$0xff]  }
 0x3db   :  { %4698 = vmatpush3.bf16.msra.mxu1 %v5383_v33  ;;  %3900 = vmatprep.subr.bf16.mxu0 %v5386_v34  ;;  %v5457_v33 = vld [vmem:[%s7216_s7 + $0x4e0] ss:$28 sps:$4 sm:$0xff]  }
 0x3dc   :  { %4699 = vmatprep.subr.bf16.mxu1 %v5387_v35  ;;  %v5462_v34 = vld [vmem:[%s7216_s7 + $0x51c] ss:$28 sps:$4 sm:$0xff]  }
 0x3dd   :  { %v5460_v35 = vld [vmem:[%s7216_s7 + $0x518] ss:$28 sps:$4 sm:$0xff]  }
 0x3de   :  { %3901 = vmatpush1.bf16.msra.mxu0 %v5384_v36  ;;  %v5465_v36 = vld [vmem:[%s7216_s7 + $0x554] ss:$28 sps:$4 sm:$0xff]  }
 0x3df   :  { %4700 = vmatpush3.bf16.msra.mxu1 %v5388_v37  ;;  %3902 = vmatprep.subr.bf16.mxu0 %v5391_v23  ;;  %v5463_v37 = vld [vmem:[%s7216_s7 + $0x550] ss:$28 sps:$4 sm:$0xff]  }
 0x3e0   :  { %4701 = vmatprep.subr.bf16.mxu1 %v5392_v38  ;;  %v5468_v23 = vld [vmem:[%s7216_s7 + $0x58c] ss:$28 sps:$4 sm:$0xff]  }
 0x3e1   :  { %v5466_v38 = vld [vmem:[%s7216_s7 + $0x588] ss:$28 sps:$4 sm:$0xff]  }
 0x3e2   :  { %3903 = vmatpush1.bf16.msra.mxu0 %v5389_v39  ;;  %v5471_v39 = vld [vmem:[%s7216_s7 + $0x5c4] ss:$28 sps:$4 sm:$0xff]  }
 0x3e3   :  { %4702 = vmatpush3.bf16.msra.mxu1 %v5393_v40  ;;  %3904 = vmatprep.subr.bf16.mxu0 %v5396_v41  ;;  %v5469_v40 = vld [vmem:[%s7216_s7 + $0x5c0] ss:$28 sps:$4 sm:$0xff]  }
 0x3e4   :  { %4703 = vmatprep.subr.bf16.mxu1 %v5397_v42  ;;  %v5474_v41 = vld [vmem:[%s7216_s7 + $0x5fc] ss:$28 sps:$4 sm:$0xff]  }
 0x3e5   :  { %v5472_v42 = vld [vmem:[%s7216_s7 + $0x5f8] ss:$28 sps:$4 sm:$0xff]  }
 0x3e6   :  { %3905 = vmatpush1.bf16.msra.mxu0 %v5394_v43  ;;  %v5477_v43 = vld [vmem:[%s7216_s7 + $0x634] ss:$28 sps:$4 sm:$0xff]  }
 0x3e7   :  { %4704 = vmatpush3.bf16.msra.mxu1 %v5398_v47  ;;  %3906 = vmatprep.subr.bf16.mxu0 %v5401_v50  ;;  %v5475_v47 = vld [vmem:[%s7216_s7 + $0x630] ss:$28 sps:$4 sm:$0xff]  }
 0x3e8   :  { %4711 = vmatprep.subr.bf16.mxu1 %v5402_v51  ;;  %v5480_v50 = vld [vmem:[%s7216_s7 + $0x66c] ss:$28 sps:$4 sm:$0xff]  }
 0x3e9   :  { %v5478_v51 = vld [vmem:[%s7216_s7 + $0x668] ss:$28 sps:$4 sm:$0xff]  }
 0x3ea   :  { %4009 = vmatmul.mubr.bf16.vlgmr.msra.gmra.mrb[20].mxu1 %v6678_v3  ;;  %3907 = vmatpush1.bf16.msra.mxu0 %v5399_v52  ;;  %v5483_v52 = vld [vmem:[%s7216_s7 + $0x6a4] ss:$28 sps:$4 sm:$0xff]  }
 0x3eb   :  { %4712 = vmatpush3.bf16.msra.mxu1 %v5403_v53  ;;  %4049 = vmatprep.mubr.bf16.mxu1 %v6684_v6  ;;  %v5481_v53 = vld [vmem:[%s7216_s7 + $0x6a0] ss:$28 sps:$4 sm:$0xff]  }
 0x3ec   :  { %3908 = vmatprep.subr.bf16.mxu0 %v5406_v54  ;;  %4713 = vmatprep.subr.bf16.mxu1 %v5407_v55  ;;  %v5486_v54 = vld [vmem:[%s7216_s7 + $0x6dc] ss:$28 sps:$4 sm:$0xff]  }
 0x3ed   :  { %v5484_v55 = vld [vmem:[%s7216_s7 + $0x6d8] ss:$28 sps:$4 sm:$0xff]  }
 0x3ee   :  { %3909 = vmatpush1.bf16.msra.mxu0 %v5404_v56  ;;  %v7179_v56 = vld [vmem:[%s7217_s8] sm:$0x7f] }
 0x3ef   :  { %4714 = vmatpush3.bf16.msra.mxu1 %v5408_v57  ;;  %3910 = vmatprep.subr.bf16.mxu0 %v5411_v58  ;;  %v2534_v57 = vrot.slane %v7179_v56, %v6310_v45  ;;  %v2542_v58 = vrot.slane %v7179_v56, %v6313_v46 }
 0x3f0   :  { %4715 = vmatprep.subr.bf16.mxu1 %v5412_v59  ;;  %v2538_v59 = vrot.slane %v7179_v56, %v6319_v48 }
 0x3f2   :  { %3911 = vmatpush1.bf16.msra.mxu0 %v5409_v60  ;;  %v2546_v60 = vrot.slane %v7179_v56, %v6322_v49 }
 0x3f3   :  { %4716 = vmatpush3.bf16.msra.mxu1 %v5413_v61  ;;  %3912 = vmatprep.subr.bf16.mxu0 %v5416_v62 }
 0x3f4   :  { %4717 = vmatprep.subr.bf16.mxu1 %v5417_v63 }
 0x3f6   :  { %3913 = vmatpush1.bf16.msra.mxu0 %v5414_v0 }
 0x3f7   :  { %4718 = vmatpush3.bf16.msra.mxu1 %v5418_v1  ;;  %3914 = vmatprep.subr.bf16.mxu0 %v5421_v2 }
 0x3f8   :  { %4719 = vmatprep.subr.bf16.mxu1 %v5422_v7 }
 0x3fa   :  { %3915 = vmatpush1.bf16.msra.mxu0 %v5419_v8 }
 0x3fb   :  { %4720 = vmatpush3.bf16.msra.mxu1 %v5423_v9  ;;  %3916 = vmatprep.subr.bf16.mxu0 %v5426_v10 }
 0x3fc   :  { %4721 = vmatprep.subr.bf16.mxu1 %v5427_v11 }
 0x3fe   :  { %3917 = vmatpush1.bf16.msra.mxu0 %v5424_v12 }
 0x3ff   :  { %4722 = vmatpush3.bf16.msra.mxu1 %v5428_v13  ;;  %3918 = vmatprep.subr.bf16.mxu0 %v5431_v14 }
 0x400   :  { %4723 = vmatprep.subr.bf16.mxu1 %v5432_v15 }
 0x402   :  { %3919 = vmatpush1.bf16.msra.mxu0 %v5429_v16 }
 0x403   :  { %4724 = vmatpush3.bf16.msra.mxu1 %v5433_v17  ;;  %3920 = vmatprep.subr.bf16.mxu0 %v5436_v18 }
 0x404   :  { %4725 = vmatprep.subr.bf16.mxu1 %v5437_v19 }
 0x406   :  { %3921 = vmatpush1.bf16.msra.mxu0 %v5434_v20 }
 0x407   :  { %4726 = vmatpush3.bf16.msra.mxu1 %v5438_v21  ;;  %3933 = vmatprep.subr.bf16.mxu0 %v5441_v22 }
 0x409   :  { %3923 = vmatmul.mubr.bf16.vlgmr.msra.gmra.mrb[12].mxu0 %v6678_v3  ;;  %v5450_v3 = vld [vmem:[%s7216_s7 + $0x43c] ss:$28 sps:$4 sm:$0xff]  }
 0x40a   :  { %4050 = vmatmul.mubr.bf16.vlgmr.msra.gmra.mrb[24].mxu1 %v6680_v4  ;;  %3934 = vmatpush1.bf16.msra.mxu0 %v5439_v24 }
 0x40b   :  { %3965 = vmatprep.mubr.bf16.mxu0 %v6684_v6  ;;  %3935 = vmatprep.subr.bf16.mxu0 %v5444_v25  ;;  %v5448_v6 = vld [vmem:[%s7216_s7 + $0x438] ss:$28 sps:$4 sm:$0xff]   ;;  %s5568_s7 = smov [#allocation2]  }
 0x40c   :  { %s4147_s8 = sshll.u32 %s5568_s7, 4  ;;  %s4148_s8 = int_to_ptr.vmem [resolvable:$true] %s4147_s8 }
 0x40d   :  { %s5543_s4 = scalar_lea.vmem %s4148_s8, 1792  ;;  %p5548_p1 = scmp.lt.s32.totalorder %s4148_s8, %s4148_s8 }
 0x40e   :  { %3936 = vmatpush1.bf16.msra.mxu0 %v5442_v5  ;;  %p5544_p0 = scmp.ne.s32.totalorder %s4148_s8, %s5543_s4  ;;  %p5549_p2 = scmp.lt.s32.totalorder %s5543_s4, %s5543_s4 }
 0x40f   :  { %3937 = vmatprep.subr.bf16.mxu0 %v5447_v26 }
 0x410   :  { %p5550_p3 = por %p5549_p2, %p5548_p1 }
 0x412   :  { %3938 = vmatpush1.bf16.msra.mxu0 %v5445_v27  ;;  %p5551_p4 = pnand %p5550_p3, %p5544_p0 }
 0x413   :  { %3939 = vmatprep.subr.bf16.mxu0 %v5450_v3 }
 0x416   :  { %3940 = vmatpush1.bf16.msra.mxu0 %v5448_v6 }
 0x417   :  { %3941 = vmatprep.subr.bf16.mxu0 %v5453_v28 }
 0x41a   :  { %3942 = vmatpush1.bf16.msra.mxu0 %v5451_v29 }
 0x41b   :  { %3943 = vmatprep.subr.bf16.mxu0 %v5456_v30 }
 0x41e   :  { %3944 = vmatpush1.bf16.msra.mxu0 %v5454_v31 }
 0x41f   :  { %3945 = vmatprep.subr.bf16.mxu0 %v5459_v32 }
 0x422   :  { %3946 = vmatpush1.bf16.msra.mxu0 %v5457_v33 }
 0x423   :  { %3947 = vmatprep.subr.bf16.mxu0 %v5462_v34 }
 0x426   :  { %3948 = vmatpush1.bf16.msra.mxu0 %v5460_v35 }
 0x427   :  { %3949 = vmatprep.subr.bf16.mxu0 %v5465_v36 }
 0x42a   :  { %3950 = vmatpush1.bf16.msra.mxu0 %v5463_v37 }
 0x42b   :  { %3951 = vmatprep.subr.bf16.mxu0 %v5468_v23 }
 0x42e   :  { %3952 = vmatpush1.bf16.msra.mxu0 %v5466_v38 }
 0x42f   :  { %3953 = vmatprep.subr.bf16.mxu0 %v5471_v39 }
 0x432   :  { %3954 = vmatpush1.bf16.msra.mxu0 %v5469_v40 }
 0x433   :  { %3955 = vmatprep.subr.bf16.mxu0 %v5474_v41 }
 0x436   :  { %3956 = vmatpush1.bf16.msra.mxu0 %v5472_v42 }
 0x437   :  { %3957 = vmatprep.subr.bf16.mxu0 %v5477_v43 }
 0x43a   :  { %3958 = vmatpush1.bf16.msra.mxu0 %v5475_v47 }
 0x43b   :  { %3959 = vmatprep.subr.bf16.mxu0 %v5480_v50 }
 0x43e   :  { %3960 = vmatpush1.bf16.msra.mxu0 %v5478_v51 }
 0x43f   :  { %3961 = vmatprep.subr.bf16.mxu0 %v5483_v52 }
 0x442   :  { %3962 = vmatpush1.bf16.msra.mxu0 %v5481_v53 }
 0x443   :  { %3963 = vmatprep.subr.bf16.mxu0 %v5486_v54 }
 0x446   :  { %3964 = vmatpush1.bf16.msra.mxu0 %v5484_v55 }
 0x449   :  { %3966 = vmatmul.mubr.bf16.vlgmr.msra.gmra.mrb[12].mxu0 %v6680_v4 }
 0x49c   :  { %v3795_v61 = vpop.f32.mrb[8].mxu0  ;;  %v3881_v62 = vpop.f32.mrb[16].mxu1 }
 0x49d   :  { %v4741_v4 = vadd.f32 %v3795_v61, %v2534_v57  ;;  %v4745_v63 = vadd.f32 %v3881_v62, %v2542_v58  ;;  %v3797_v0 = vpop.f32.mrb[9].mxu0  ;;  %v3883_v1 = vpop.f32.mrb[17].mxu1  ;;  %v2557_v61 = vsub.s32 6, %v6307_v44 }
 0x49e   :  { %v4742_v2 = vadd.f32 %v3797_v0, %v2538_v59  ;;  %v4746_v7 = vadd.f32 %v3883_v1, %v2546_v60  ;;  %v3799_v8 = vpop.f32.mrb[10].mxu0  ;;  %v3885_v9 = vpop.f32.mrb[18].mxu1 }
 0x49f   :  { %v4058_v45 = vsub.f32 0.0, %v4741_v4  ;;  %v4060_v10 = vsub.f32 0.0, %v4745_v63  ;;  %v4743_v11 = vadd.f32 %v3799_v8, %v2534_v57  ;;  %v4747_v46 = vadd.f32 %v3885_v9, %v2542_v58  ;;  %v3801_v12 = vpop.f32.mrb[11].mxu0  ;;  %v3887_v13 = vpop.f32.mrb[19].mxu1 }
 0x4a0   :  { %v4059_v48 = vsub.f32 0.0, %v4742_v2  ;;  %v4061_v14 = vsub.f32 0.0, %v4746_v7  ;;  %v4744_v15 = vadd.f32 %v3801_v12, %v2538_v59  ;;  %v4748_v49 = vadd.f32 %v3887_v13, %v2546_v60 }
 0x4a1   :  { %v4072_v16 = vmul.f32 1.442695, %v4058_v45  ;;  %v4076_v17 = vmul.f32 1.442695, %v4060_v10  ;;  %v4065_v18 = vsub.f32 0.0, %v4743_v11  ;;  %v4067_v19 = vsub.f32 0.0, %v4747_v46 }
 0x4a2   :  { %v4074_v20 = vmul.f32 1.442695, %v4059_v48  ;;  %v4078_v21 = vmul.f32 1.442695, %v4061_v14  ;;  %v4066_v22 = vsub.f32 0.0, %v4744_v15  ;;  %v4068_v24 = vsub.f32 0.0, %v4748_v49 }
 0x4a3   :  { %5487 = vpow2.f32 %v4072_v16  ;;  %v4086_v25 = vmul.f32 1.442695, %v4065_v18  ;;  %v4090_v5 = vmul.f32 1.442695, %v4067_v19  ;;  %v2558_v62 = vrot.slane %v7179_v56, %v2557_v61 }
 0x4a4   :  { %5489 = vpow2.f32 %v4076_v17  ;;  %v4088_v26 = vmul.f32 1.442695, %v4066_v22  ;;  %v4092_v27 = vmul.f32 1.442695, %v4068_v24  ;;  %v2549_v18 = vsub.s32 4, %v6307_v44 }
 0x4a5   :  { %5491 = vpow2.f32 %v4074_v20  ;;  %v2553_v19 = vsub.s32 5, %v6307_v44 }
 0x4a6   :  { %5493 = vpow2.f32 %v4078_v21  ;;  %v2550_v20 = vrot.slane %v7179_v56, %v2549_v18 }
 0x4a7   :  { %5495 = vpow2.f32 %v4086_v25  ;;  %v2554_v21 = vrot.slane %v7179_v56, %v2553_v19 }
 0x4a8   :  { %5497 = vpow2.f32 %v4090_v5 }
 0x4a9   :  { %5499 = vpow2.f32 %v4088_v26 }
 0x4aa   :  { %5501 = vpow2.f32 %v4092_v27 }
 0x4ad   :  { %v5488_v3 = vpop.eup %5487 }
 0x4ae   :  { %v5490_v6 = vpop.eup %5489  ;;  %v4100_v28 = vadd.f32 1.0, %v5488_v3 }
 0x4af   :  { %v5492_v29 = vpop.eup %5491  ;;  %v4102_v30 = vadd.f32 1.0, %v5490_v6 }
 0x4b0   :  { %v5494_v31 = vpop.eup %5493  ;;  %5503 = vrcp.f32 %v4100_v28  ;;  %v4101_v32 = vadd.f32 1.0, %v5492_v29 }
 0x4b1   :  { %v5496_v33 = vpop.eup %5495  ;;  %5505 = vrcp.f32 %v4102_v30  ;;  %v4103_v34 = vadd.f32 1.0, %v5494_v31 }
 0x4b2   :  { %v5498_v35 = vpop.eup %5497  ;;  %5507 = vrcp.f32 %v4101_v32  ;;  %v4107_v36 = vadd.f32 1.0, %v5496_v33 }
 0x4b3   :  { %v5500_v37 = vpop.eup %5499  ;;  %5509 = vrcp.f32 %v4103_v34  ;;  %v4109_v23 = vadd.f32 1.0, %v5498_v35 }
 0x4b4   :  { %v5502_v38 = vpop.eup %5501  ;;  %5511 = vrcp.f32 %v4107_v36  ;;  %v4108_v39 = vadd.f32 1.0, %v5500_v37 }
 0x4b5   :  { %5513 = vrcp.f32 %v4109_v23  ;;  %v4110_v40 = vadd.f32 1.0, %v5502_v38 }
 0x4b6   :  { %5515 = vrcp.f32 %v4108_v39 }
 0x4b7   :  { %5517 = vrcp.f32 %v4110_v40 }
 0x4ba   :  { %v5504_v41 = vpop.eup %5503 }
 0x4bb   :  { %v5506_v42 = vpop.eup %5505  ;;  %4128 = vst [vmem:[#allocation2] sm:$0xff] %v5504_v41 }
 0x4bc   :  { %v5508_v43 = vpop.eup %5507  ;;  %4130 = vst [vmem:[#allocation2 + $0x10] sm:$0xff] %v5506_v42 }
 0x4bd   :  { %v5510_v47 = vpop.eup %5509  ;;  %4129 = vst [vmem:[#allocation2 + $0x8] sm:$0xff] %v5508_v43  ;;  %v4705_v50 = vpop.f32.mrb[20].mxu1 }
 0x4be   :  { %v5512_v51 = vpop.eup %5511  ;;  %4131 = vst [vmem:[#allocation2 + $0x18] sm:$0xff] %v5510_v47  ;;  %v4706_v52 = vpop.f32.mrb[21].mxu1 }
 0x4bf   :  { %v5514_v53 = vpop.eup %5513  ;;  %4135 = vst [vmem:[#allocation2 + $0x38] sm:$0xff] %v5512_v51  ;;  %v4707_v54 = vadd.f32 %v4706_v52, %v4705_v50  ;;  %v4708_v55 = vpop.f32.mrb[22].mxu1 }
 0x4c0   :  { %v5516_v57 = vpop.eup %5515  ;;  %4137 = vst [vmem:[#allocation2 + $0x48] sm:$0xff] %v5514_v53  ;;  %v4709_v58 = vpop.f32.mrb[23].mxu1 }
 0x4c1   :  { %v5518_v59 = vpop.eup %5517  ;;  %4136 = vst [vmem:[#allocation2 + $0x40] sm:$0xff] %v5516_v57  ;;  %v4710_v60 = vadd.f32 %v4709_v58, %v4708_v55  ;;  %v4011_v0 = vadd.f32 %v4707_v54, %v2558_v62 }
 0x4c2   :  { %4138 = vst [vmem:[#allocation2 + $0x50] sm:$0xff] %v5518_v59 }
 0x4c3   :  { %v4014_v8 = vadd.f32 %v4710_v60, %v2558_v62 }
 0x4dd   :  { %v4727_v4 = vpop.f32.mrb[24].mxu1 }
 0x4de   :  { %v4728_v63 = vpop.f32.mrb[25].mxu1 }
 0x4df   :  { %v4729_v1 = vadd.f32 %v4728_v63, %v4727_v4  ;;  %v4730_v2 = vpop.f32.mrb[26].mxu1 }
 0x4e0   :  { %v4731_v7 = vpop.f32.mrb[27].mxu1 }
 0x4e1   :  { %v4052_v9 = vadd.f32 %v4729_v1, %v4011_v0  ;;  %v4732_v45 = vadd.f32 %v4731_v7, %v4730_v2 }
 0x4e3   :  { %v4064_v10 = vsub.f32 0.0, %v4052_v9  ;;  %v4055_v11 = vadd.f32 %v4732_v45, %v4014_v8 }
 0x4e5   :  { %v4084_v46 = vmul.f32 1.442695, %v4064_v10  ;;  %v4071_v12 = vsub.f32 0.0, %v4055_v11 }
 0x4e7   :  { %5519 = vpow2.f32 %v4084_v46  ;;  %v4098_v13 = vmul.f32 1.442695, %v4071_v12 }
 0x4e9   :  { %5521 = vpow2.f32 %v4098_v13 }
 0x4f1   :  { %v5520_v48 = vpop.eup %5519 }
 0x4f2   :  { %v4106_v14 = vadd.f32 1.0, %v5520_v48 }
 0x4f3   :  { %v5522_v15 = vpop.eup %5521 }
 0x4f4   :  { %5523 = vrcp.f32 %v4106_v14  ;;  %v4113_v49 = vadd.f32 1.0, %v5522_v15 }
 0x4f6   :  { %5525 = vrcp.f32 %v4113_v49 }
 0x4fe   :  { %v5524_v16 = vpop.eup %5523 }
 0x4ff   :  { %4134 = vst.msk [vmem:[#allocation2 + $0x30] sm:$0xff] %vm1253_vm0, %v5524_v16 }
 0x500   :  { %v5526_v17 = vpop.eup %5525 }
 0x501   :  { %4141 = vst.msk [vmem:[#allocation2 + $0x68] sm:$0xff] %vm1253_vm0, %v5526_v17 }
 0x51c   :  { %v3967_v22 = vpop.f32.mrb[12].mxu0 }
 0x51d   :  { %v4749_v24 = vadd.f32 %v3967_v22, %v2550_v20  ;;  %v3969_v25 = vpop.f32.mrb[13].mxu0 }
 0x51e   :  { %v4750_v5 = vadd.f32 %v3969_v25, %v2554_v21  ;;  %v3971_v26 = vpop.f32.mrb[14].mxu0 }
 0x51f   :  { %v4062_v27 = vsub.f32 0.0, %v4749_v24  ;;  %v4751_v3 = vadd.f32 %v3971_v26, %v2550_v20  ;;  %v3973_v6 = vpop.f32.mrb[15].mxu0 }
 0x520   :  { %v4063_v28 = vsub.f32 0.0, %v4750_v5  ;;  %v4752_v29 = vadd.f32 %v3973_v6, %v2554_v21 }
 0x521   :  { %v4080_v30 = vmul.f32 1.442695, %v4062_v27  ;;  %v4069_v31 = vsub.f32 0.0, %v4751_v3 }
 0x522   :  { %v4082_v32 = vmul.f32 1.442695, %v4063_v28  ;;  %v4070_v33 = vsub.f32 0.0, %v4752_v29 }
 0x523   :  { %5527 = vpow2.f32 %v4080_v30  ;;  %v4094_v44 = vmul.f32 1.442695, %v4069_v31 }
 0x524   :  { %5529 = vpow2.f32 %v4082_v32  ;;  %v4096_v34 = vmul.f32 1.442695, %v4070_v33 }
 0x525   :  { %5531 = vpow2.f32 %v4094_v44 }
 0x526   :  { %5533 = vpow2.f32 %v4096_v34 }
 0x52d   :  { %v5528_v56 = vpop.eup %5527 }
 0x52e   :  { %v5530_v35 = vpop.eup %5529  ;;  %v4104_v36 = vadd.f32 1.0, %v5528_v56 }
 0x52f   :  { %v5532_v37 = vpop.eup %5531  ;;  %v4105_v23 = vadd.f32 1.0, %v5530_v35 }
 0x530   :  { %v5534_v38 = vpop.eup %5533  ;;  %5535 = vrcp.f32 %v4104_v36  ;;  %v4111_v39 = vadd.f32 1.0, %v5532_v37 }
 0x531   :  { %5537 = vrcp.f32 %v4105_v23  ;;  %v4112_v40 = vadd.f32 1.0, %v5534_v38 }
 0x532   :  { %5539 = vrcp.f32 %v4111_v39 }
 0x533   :  { %5541 = vrcp.f32 %v4112_v40 }
 0x53a   :  { %v5536_v41 = vpop.eup %5535 }
 0x53b   :  { %v5538_v42 = vpop.eup %5537  ;;  %4132 = vst [vmem:[#allocation2 + $0x20] sm:$0xff] %v5536_v41 }
 0x53c   :  { %v5540_v43 = vpop.eup %5539  ;;  %4133 = vst [vmem:[#allocation2 + $0x28] sm:$0xff] %v5538_v42 }
 0x53d   :  { %v5542_v47 = vpop.eup %5541  ;;  %4139 = vst [vmem:[#allocation2 + $0x58] sm:$0xff] %v5540_v43 }
 0x53e   :  { %4140 = vst [vmem:[#allocation2 + $0x60] sm:$0xff] %v5542_v47 }
 0x53f   :  { %5554 = shalt.err (!%p5551_p4)
}
 0x540   :  { %s5555_s25 = scalar_lea.hbm %s7218_s9, 1792 }
 0x541   :  { %p5556_p5 = scmp.ne.s32.totalorder %s7218_s9, %s5555_s25  ;;  %p5559_p6 = scmp.lt.u32.totalorder %s5555_s25, %s7218_s9 }
 0x543   :  { %p5561_p7 = pnand %p5559_p6, %p5556_p5 }
 0x545   :  { %5564 = shalt.err (!%p5561_p7)
}
 0x546   :  { %s5569_s29 = smov 896   ;;  %s5570_s30 = smov 56  }
 0x547   :  { %4153 = dma.vmem_to_hbm [thread:$0]  %s4148_s8, 1792, %s7218_s9, [#allocation3], %s5569_s29, %s5569_s29, %s5570_s30  }
 0x548   :  { %5565 = dma.done.wait [#allocation3], 1792  }
 0x549   :  { %5566 = vsyncadd [#allocation3], 4294965504 }
 0x54a   :  { %4157 = vsyncpa [#allocation3], 1 }

</bundles_post_ra>
